<compile_context>
chip_gen: v5e
topology: v5e:2x2
jax: 0.10.0
libtpu: 0.0.40
codegen_flags: <defaults>
</compile_context>

<pallas_src>
import functools

import jax
import jax.numpy as jnp
from jax import lax
from jax.experimental import pallas as pl
from jax.experimental.pallas import tpu as pltpu

LANE = 128


def _round_up(x, m):
    return (x + m - 1) // m * m


# ----------------------------------------------------------------------------
# Pallas kernel 1: offset head = 3x3 conv (3 row-shifted matmuls over the
# kw-im2col'd, W-padded input) + BatchNorm(train, global stats) + tanh.
# Grid = (phase, batch):  phase 0 accumulates per-column sum / sum-of-squares,
# phase 1 recomputes the (cheap) conv and normalizes with the global stats.
# ----------------------------------------------------------------------------
def _offset_head_kernel(x_ref, w_ref, b_ref, g_ref, be_ref, o_ref,
                        sum_sc, ssq_sc, *, W, H, n_rows):
    phase = pl.program_id(0)
    bi = pl.program_id(1)
    WH = W * H

    x = x_ref[0]                                   # ((W+2)*H, 3C)
    # 3x3 conv == sum over kh of a row-shifted (WH, 3C) x (3C, COUTP) matmul.
    y = jnp.dot(x[0:WH, :], w_ref[0], preferred_element_type=jnp.float32)
    y = y + jnp.dot(x[H:H + WH, :], w_ref[1],
                    preferred_element_type=jnp.float32)
    y = y + jnp.dot(x[2 * H:2 * H + WH, :], w_ref[2],
                    preferred_element_type=jnp.float32)
    y = y + b_ref[...]

    @pl.when(jnp.logical_and(phase == 0, bi == 0))
    def _init():
        sum_sc[...] = jnp.zeros_like(sum_sc)
        ssq_sc[...] = jnp.zeros_like(ssq_sc)

    @pl.when(phase == 0)
    def _stats():
        sum_sc[...] += jnp.sum(y, axis=0, keepdims=True)
        ssq_sc[...] += jnp.sum(y * y, axis=0, keepdims=True)
        o_ref[0] = y                               # placeholder; overwritten in phase 1

    @pl.when(phase == 1)
    def _finalize():
        inv_n = 1.0 / float(n_rows)
        mean = sum_sc[...] * inv_n
        var = ssq_sc[...] * inv_n - mean * mean    # biased variance (BN training)
        yn = (y - mean) * lax.rsqrt(var + 1e-5) * g_ref[...] + be_ref[...]
        o_ref[0] = jnp.tanh(yn)


def offset_head_pallas(x3, wstack, bias, gamma, beta, *, W, H):
    # x3:     (B, (W+2)*H, 3C)   rows = (w_pad, h), cols = kw*C + c
    # wstack: (3, 3C, 2K)        wstack[kh, kw*C+c, o] = w_off[o, c, kh, kw]
    B, RP, C3 = x3.shape
    COUT = wstack.shape[-1]
    WH = W * H
    COUTP = _round_up(COUT, LANE)                  # lane-dense output

    w_p = jnp.pad(wstack, ((0, 0), (0, 0), (0, COUTP - COUT)))
    b_p = jnp.pad(bias, (0, COUTP - COUT)).reshape(1, COUTP)
    g_p = jnp.pad(gamma, (0, COUTP - COUT)).reshape(1, COUTP)
    be_p = jnp.pad(beta, (0, COUTP - COUT)).reshape(1, COUTP)

    kern = functools.partial(_offset_head_kernel, W=W, H=H, n_rows=B * WH)
    out = pl.pallas_call(
        kern,
        out_shape=jax.ShapeDtypeStruct((B, WH, COUTP), jnp.float32),
        grid_spec=pltpu.PrefetchScalarGridSpec(
            num_scalar_prefetch=0,
            grid=(2, B),                           # (phase, batch); phase must be outermost
            in_specs=[
                pl.BlockSpec((1, RP, C3), lambda p, b: (b, 0, 0)),
                pl.BlockSpec((3, C3, COUTP), lambda p, b: (0, 0, 0)),
                pl.BlockSpec((1, COUTP), lambda p, b: (0, 0)),
                pl.BlockSpec((1, COUTP), lambda p, b: (0, 0)),
                pl.BlockSpec((1, COUTP), lambda p, b: (0, 0)),
            ],
            out_specs=pl.BlockSpec((1, WH, COUTP), lambda p, b: (b, 0, 0)),
            scratch_shapes=[pltpu.VMEM((1, COUTP), jnp.float32),
                            pltpu.VMEM((1, COUTP), jnp.float32)],
        ),
        # BN stats are global over the whole batch -> both axes sequential.
        compiler_params=pltpu.CompilerParams(
            dimension_semantics=("arbitrary", "arbitrary"),
            vmem_limit_bytes=48 * 1024 * 1024),
    )(x3, w_p, b_p, g_p, be_p)
    return out[:, :, :COUT]


def offset_head_ref(x3, wstack, bias, gamma, beta, *, W, H):
    WH = W * H
    taps = [x3[:, kh * H:kh * H + WH, :] for kh in range(3)]
    y = sum(jnp.einsum("brc,co->bro", taps[kh], wstack[kh],
                       precision=lax.Precision.HIGHEST) for kh in range(3))
    y = y + bias
    mean = jnp.mean(y, axis=(0, 1), keepdims=True)
    var = jnp.mean((y - mean) ** 2, axis=(0, 1), keepdims=True)
    yn = (y - mean) * lax.rsqrt(var + 1e-5) * gamma + beta
    return jnp.tanh(yn)


# ----------------------------------------------------------------------------
# Pallas kernel 2: fused bilinear gather (one-hot x matmul from the in-VMEM
# feature table) + snake conv + GroupNorm + ReLU.
# Grid = (batch, phase, pixel-tile): phase 0 accumulates GroupNorm partial
# sums over the P tiles, phase 1 normalizes and writes the final output.
# ----------------------------------------------------------------------------
def _dsconv_body_kernel(f0_ref, idx_ref, vol_ref, w_ref, b_ref, gavg_ref,
                        g_ref, be_ref, o_ref, sum_sc, ssq_sc,
                        *, K, C, WH, P, PT, OPAD):
    phase = pl.program_id(1)
    pt = pl.program_id(2)

    f0 = f0_ref[...]                               # (WH, C)  feature table (batch 0 quirk)
    idx = idx_ref[0]                               # (PT, 4K) int32, col = k*4 + corner
    vol = vol_ref[0]                               # (PT, 4K) bilinear weights

    lane_wh = lax.broadcasted_iota(jnp.int32, (PT, WH), 1)
    y = jnp.zeros((PT, OPAD), jnp.float32) + b_ref[...]
    for k in range(K):
        # tap-k projected table: G_k[wh, o] = sum_c f0[wh, c] * w[o, c, k]
        g_k = jnp.dot(f0, w_ref[k], preferred_element_type=jnp.float32)
        # bilinear gather as a sparse combination matrix built from the indices
        # TODO(synk): one-hot gather is O(W*H) work per pixel; fine for small
        # feature maps, large maps would need a DMA / dynamic-gather path.
        a = jnp.zeros((PT, WH), jnp.float32)
        for corner in range(4):
            col = k * 4 + corner
            a = a + jnp.where(lane_wh == idx[:, col:col + 1],
                              vol[:, col:col + 1], 0.0)
        y = y + jnp.dot(a, g_k, preferred_element_type=jnp.float32)

    @pl.when(jnp.logical_and(phase == 0, pt == 0))
    def _init():
        sum_sc[...] = jnp.zeros_like(sum_sc)
        ssq_sc[...] = jnp.zeros_like(ssq_sc)

    @pl.when(phase == 0)
    def _stats():
        sum_sc[...] += jnp.sum(y, axis=0, keepdims=True)
        ssq_sc[...] += jnp.sum(y * y, axis=0, keepdims=True)
        o_ref[0] = y                               # placeholder; overwritten in phase 1

    @pl.when(phase == 1)
    def _finalize():
        inv_n = 1.0 / float(P)
        col_mean = sum_sc[...] * inv_n
        col_sq = ssq_sc[...] * inv_n
        g_mean = jnp.dot(col_mean, gavg_ref[...],
                         preferred_element_type=jnp.float32)
        g_sq = jnp.dot(col_sq, gavg_ref[...],
                       preferred_element_type=jnp.float32)
        g_var = g_sq - g_mean * g_mean
        yn = (y - g_mean) * lax.rsqrt(g_var + 1e-5)
        yn = yn * g_ref[...] + be_ref[...]
        o_ref[0] = jnp.maximum(yn, 0.0)            # ReLU


def _pick_pixel_tile(P):
    # Biggest tile that divides P (fewer grid steps -> less per-step overhead),
    # capped so the in-kernel one-hot matrices stay comfortably inside VMEM.
    for t in (512, 256, 128):
        if P % t == 0:
            return t
    return P


def dsconv_body_pallas(f0, idx, vol, wstack2, bias, gavg, gamma, beta):
    # f0: (WH, C); idx/vol: (B, P, 4K); wstack2: (K, C, O); gavg: (O, O)
    B, P, K4 = idx.shape
    K, C, O = wstack2.shape
    WH = f0.shape[0]
    OPAD = _round_up(O, LANE)                      # lane-dense output
    p_tile = _pick_pixel_tile(P)

    w_p = jnp.pad(wstack2, ((0, 0), (0, 0), (0, OPAD - O)))
    b_p = jnp.pad(bias, (0, OPAD - O)).reshape(1, OPAD)
    gavg_p = jnp.pad(gavg, ((0, OPAD - O), (0, OPAD - O)))
    g_p = jnp.pad(gamma, (0, OPAD - O)).reshape(1, OPAD)
    be_p = jnp.pad(beta, (0, OPAD - O)).reshape(1, OPAD)

    kern = functools.partial(_dsconv_body_kernel, K=K, C=C, WH=WH, P=P,
                             PT=p_tile, OPAD=OPAD)
    out = pl.pallas_call(
        kern,
        out_shape=jax.ShapeDtypeStruct((B, P, OPAD), jnp.float32),
        grid_spec=pltpu.PrefetchScalarGridSpec(
            num_scalar_prefetch=0,
            grid=(B, 2, P // p_tile),              # (batch, phase, pixel tile)
            in_specs=[
                pl.BlockSpec((WH, C), lambda b, p, t: (0, 0)),
                pl.BlockSpec((1, p_tile, K4), lambda b, p, t: (b, t, 0)),
                pl.BlockSpec((1, p_tile, K4), lambda b, p, t: (b, t, 0)),
                pl.BlockSpec((K, C, OPAD), lambda b, p, t: (0, 0, 0)),
                pl.BlockSpec((1, OPAD), lambda b, p, t: (0, 0)),
                pl.BlockSpec((OPAD, OPAD), lambda b, p, t: (0, 0)),
                pl.BlockSpec((1, OPAD), lambda b, p, t: (0, 0)),
                pl.BlockSpec((1, OPAD), lambda b, p, t: (0, 0)),
            ],
            out_specs=pl.BlockSpec((1, p_tile, OPAD), lambda b, p, t: (b, t, 0)),
            scratch_shapes=[pltpu.VMEM((1, OPAD), jnp.float32),
                            pltpu.VMEM((1, OPAD), jnp.float32)],
        ),
        # batch axis parallel (megacore on v7x); phase / pixel-tile must stay
        # sequential because GroupNorm partial sums accumulate across them.
        compiler_params=pltpu.CompilerParams(
            dimension_semantics=("parallel", "arbitrary", "arbitrary"),
            vmem_limit_bytes=48 * 1024 * 1024),
    )(f0, idx, vol, w_p, b_p, gavg_p, g_p, be_p)
    return out[:, :, :O]


def dsconv_body_ref(f0_flat, idx, vol, wmat, bias, gavg, gamma, beta, *, K):
    # Plain-JAX reference with the original gather -> combine -> conv ordering.
    B, P, _ = idx.shape
    C = f0_flat.shape[1]
    vals = f0_flat[idx.reshape(B, P, K, 4)]                         # (B,P,K,4,C)
    x = jnp.sum(vals * vol.reshape(B, P, K, 4)[..., None], axis=3)  # (B,P,K,C)
    x = x.reshape(B, P, K * C)
    y = jnp.einsum("bpk,ko->bpo", x, wmat,
                   precision=lax.Precision.HIGHEST) + bias
    col_mean = jnp.mean(y, axis=1, keepdims=True)
    col_sq = jnp.mean(y * y, axis=1, keepdims=True)
    g_mean = col_mean @ gavg
    g_sq = col_sq @ gavg
    g_var = g_sq - g_mean * g_mean
    yn = (y - g_mean) * lax.rsqrt(g_var + 1e-5) * gamma + beta
    return jnp.maximum(yn, 0.0)


# ----------------------------------------------------------------------------
# Full DSConv forward (coordinate glue in plain JAX, hot paths in Pallas).
# ----------------------------------------------------------------------------
def dsconv_forward(f, params, kernel_size, extend_scope, morph, if_offset,
                   use_pallas=True):
    B, C, W, H = f.shape
    K = kernel_size
    WH = W * H
    COUT = 2 * K

    # ---- 1) offset head: 3x3 conv + BN(train) + tanh ----
    # kw-direction im2col only (3x instead of 9x); kh taps handled in-kernel.
    # TODO(synk): full in-kernel halo handling (1x read) would need
    # element-offset (overlapping) block index maps.
    fpad = jnp.pad(f, ((0, 0), (0, 0), (1, 1), (1, 1)))       # (B, C, W+2, H+2)
    fpad_t = jnp.transpose(fpad, (0, 2, 3, 1))                # (B, W+2, H+2, C)
    x3 = jnp.stack([fpad_t[:, :, kw:kw + H, :] for kw in range(3)], axis=3)
    x3 = x3.reshape(B, (W + 2) * H, 3 * C)                    # rows=(w_pad,h), cols=kw*C+c

    # wstack[kh, kw*C + c, o] = w_off[o, c, kh, kw]
    wstack = jnp.transpose(params["w_off"], (2, 3, 1, 0)).reshape(3, 3 * C, COUT)
    head_fn = offset_head_pallas if use_pallas else offset_head_ref
    off = head_fn(x3, wstack, params["b_off"], params["bn_gamma"],
                  params["bn_beta"], W=W, H=H)                # (B, WH, 2K)
    offset = jnp.transpose(off.reshape(B, W, H, COUT), (0, 3, 1, 2))
    y_off, x_off = offset[:, :K], offset[:, K:]               # (B, K, W, H) each

    # ---- 2) snake coordinate map ----
    center = K // 2
    lin = jnp.linspace(-float(center), float(center), K).astype(jnp.float32)
    ii = jnp.arange(W, dtype=jnp.float32)
    jj = jnp.arange(H, dtype=jnp.float32)

    def accumulate(off_k):  # reproduces the reference's range(1, center) quirk
        chans = [off_k[:, k] for k in range(K)]
        chans[center] = jnp.zeros_like(chans[center])
        for step in range(1, center):  # NOTE: matches reference exactly
            chans[center + step] = chans[center + step - 1] + off_k[:, center + step]
            chans[center - step] = chans[center - step + 1] + off_k[:, center - step]
        return jnp.stack(chans, axis=1)

    if morph == 0:
        y_new = jnp.broadcast_to(ii[None, None, :, None], (B, K, W, H))
        x_new = jnp.broadcast_to(jj[None, None, None, :] + lin[None, :, None, None],
                                 (B, K, W, H))
        if if_offset:
            y_new = y_new + extend_scope * accumulate(y_off)
        w_conv, b_conv = params["w_x"], params["b_x"]         # (O, C, K, 1)
    else:
        y_new = jnp.broadcast_to(ii[None, None, :, None] + lin[None, :, None, None],
                                 (B, K, W, H))
        x_new = jnp.broadcast_to(jj[None, None, None, :], (B, K, W, H))
        if if_offset:
            x_new = x_new + extend_scope * accumulate(x_off)
        w_conv, b_conv = params["w_y"], params["b_y"]         # (O, C, 1, K)

    yc = jnp.transpose(y_new, (0, 2, 3, 1))                   # (B, W, H, K)
    xc = jnp.transpose(x_new, (0, 2, 3, 1))

    # ---- 3) bilinear corner indices + weights (data-independent prep only;
    #          the gather itself happens inside kernel 2) ----
    # NOTE: reference indexes only batch 0 ("base" cancels) — reproduced on purpose.
    f0_flat = jnp.transpose(f[0], (1, 2, 0)).reshape(WH, C)   # row = y*H + x
    y0 = jnp.floor(yc).astype(jnp.int32)
    x0 = jnp.floor(xc).astype(jnp.int32)
    y0i = jnp.clip(y0, 0, W - 1)
    y1i = jnp.clip(y0 + 1, 0, W - 1)
    x0i = jnp.clip(x0, 0, H - 1)
    x1i = jnp.clip(x0 + 1, 0, H - 1)
    # corners ordered (a0, c0, a1, c1)
    idx = jnp.stack([y0i * H + x0i, y0i * H + x1i,
                     y1i * H + x0i, y1i * H + x1i], axis=-1)  # (B, W, H, K, 4)
    # interpolation weights (wider clamp range, as in reference)
    y0f = jnp.clip(y0, 0, W).astype(jnp.float32)
    y1f = jnp.clip(y0 + 1, 0, W).astype(jnp.float32)
    x0f = jnp.clip(x0, 0, H).astype(jnp.float32)
    x1f = jnp.clip(x0 + 1, 0, H).astype(jnp.float32)
    vol = jnp.stack([(y1f - yc) * (x1f - xc),
                     (y1f - yc) * (xc - x0f),
                     (yc - y0f) * (x1f - xc),
                     (yc - y0f) * (xc - x0f)], axis=-1)       # (B, W, H, K, 4)
    P = WH
    idx = idx.reshape(B, P, K * 4).astype(jnp.int32)
    vol = vol.reshape(B, P, K * 4).astype(jnp.float32)

    # ---- 4) snake conv + GroupNorm + ReLU ----
    O = w_conv.shape[0]
    wstack2 = jnp.transpose(w_conv.reshape(O, C, K), (2, 1, 0))  # (K, C, O)
    num_groups = O // 4
    cpg = O // num_groups
    gids = jnp.arange(O) // cpg
    gavg = (gids[:, None] == gids[None, :]).astype(jnp.float32) / cpg  # (O, O)

    if use_pallas:
        out = dsconv_body_pallas(f0_flat, idx, vol, wstack2, b_conv, gavg,
                                 params["gn_gamma"], params["gn_beta"])
    else:
        out = dsconv_body_ref(f0_flat, idx, vol, wstack2.reshape(K * C, O),
                              b_conv, gavg, params["gn_gamma"],
                              params["gn_beta"], K=K)
    # (B, P, O) -> NCHW (B, O, W, H)
    return jnp.transpose(out.reshape(B, W, H, O), (0, 3, 1, 2))


# ----------------------------------------------------------------------------
if __name__ == "__main__":
    B, C_in, W, H = 2, 4, 16, 16
    out_ch, K = 8, 3
    extend_scope = 1.0
    if_offset = True

    key = jax.random.PRNGKey(0)
    ks = jax.random.split(key, 8)
    params = {
        "w_off": 0.1 * jax.random.normal(ks[0], (2 * K, C_in, 3, 3), jnp.float32),
        "b_off": 0.1 * jax.random.normal(ks[1], (2 * K,), jnp.float32),
        "bn_gamma": jnp.ones((2 * K,), jnp.float32),
        "bn_beta": jnp.zeros((2 * K,), jnp.float32),
        "w_x": 0.1 * jax.random.normal(ks[2], (out_ch, C_in, K, 1), jnp.float32),
        "b_x": 0.1 * jax.random.normal(ks[3], (out_ch,), jnp.float32),
        "w_y": 0.1 * jax.random.normal(ks[4], (out_ch, C_in, 1, K), jnp.float32),
        "b_y": 0.1 * jax.random.normal(ks[5], (out_ch,), jnp.float32),
        "gn_gamma": jnp.ones((out_ch,), jnp.float32),
        "gn_beta": jnp.zeros((out_ch,), jnp.float32),
    }
    f = jax.random.normal(ks[6], (B, C_in, W, H), jnp.float32)

    ok = True
    for morph in (0, 1):
        out = dsconv_forward(f, params, K, extend_scope, morph, if_offset,
                             use_pallas=True)
        out = jax.block_until_ready(out)
        assert out.shape == (B, out_ch, W, H), out.shape
        ref = dsconv_forward(f, params, K, extend_scope, morph, if_offset,
                             use_pallas=False)
        ref = jax.block_until_ready(ref)
        if not jnp.allclose(out, ref, rtol=2e-3, atol=2e-3):
            ok = False
            print("morph", morph, "max abs diff",
                  float(jnp.max(jnp.abs(out - ref))))

    if ok:
        print("KERNEL_OK")
</pallas_src>

<mosaic_0001>
module attributes {stable_mosaic.version = 11 : i64} {
  func.func @_offset_head_kernel(%arg0: i32, %arg1: i32, %arg2: memref<1x288x12xf32, #tpu.memory_space<vmem>>, %arg3: memref<3x12x128xf32, #tpu.memory_space<vmem>>, %arg4: memref<1x128xf32, #tpu.memory_space<vmem>>, %arg5: memref<1x128xf32, #tpu.memory_space<vmem>>, %arg6: memref<1x128xf32, #tpu.memory_space<vmem>>, %arg7: memref<1x256x128xf32, #tpu.memory_space<vmem>>, %arg8: memref<1x128xf32, #tpu.memory_space<vmem>>, %arg9: memref<1x128xf32, #tpu.memory_space<vmem>>) attributes {dimension_semantics = [#tpu.dimension_semantics<arbitrary>, #tpu.dimension_semantics<arbitrary>], iteration_bounds = array<i64: 2, 2>, scalar_prefetch = 0 : i64, scratch_operands = 2 : i64, tpu.core_type = #tpu.core_type<tc>, window_params = [{transform_indices = @transform_0, window_bounds = array<i64: 1, 288, 12>}, {pipeline_mode = #tpu.pipeline_mode<synchronous>, transform_indices = @transform_1, window_bounds = array<i64: 3, 12, 128>}, {pipeline_mode = #tpu.pipeline_mode<synchronous>, transform_indices = @transform_2, window_bounds = array<i64: 1, 128>}, {pipeline_mode = #tpu.pipeline_mode<synchronous>, transform_indices = @transform_3, window_bounds = array<i64: 1, 128>}, {pipeline_mode = #tpu.pipeline_mode<synchronous>, transform_indices = @transform_4, window_bounds = array<i64: 1, 128>}, {transform_indices = @transform_5, window_bounds = array<i64: 1, 256, 128>}]} {
    %c0 = arith.constant 0 : index
    %c0_0 = arith.constant 0 : index
    %c0_1 = arith.constant 0 : index
    %0 = vector.load %arg2[%c0, %c0_0, %c0_1] : memref<1x288x12xf32, #tpu.memory_space<vmem>>, vector<1x288x12xf32>
    %1 = vector.shape_cast %0 : vector<1x288x12xf32> to vector<288x12xf32>
    %2 = vector.extract_strided_slice %1 {offsets = [0, 0], sizes = [256, 12], strides = [1, 1]} : vector<288x12xf32> to vector<256x12xf32>
    %c0_2 = arith.constant 0 : index
    %c0_3 = arith.constant 0 : index
    %c0_4 = arith.constant 0 : index
    %3 = vector.load %arg3[%c0_2, %c0_3, %c0_4] : memref<3x12x128xf32, #tpu.memory_space<vmem>>, vector<1x12x128xf32>
    %4 = vector.shape_cast %3 : vector<1x12x128xf32> to vector<12x128xf32>
    %cst = arith.constant dense<0.000000e+00> : vector<256x128xf32>
    %5 = tpu.matmul %2, %4, %cst {dimension_numbers = #tpu.dot_dimension_numbers<[1], [0], [0], [1], [0, 0, 1, 1], [], []>} : vector<256x12xf32>, vector<12x128xf32>, vector<256x128xf32> -> vector<256x128xf32>
    %6 = vector.extract_strided_slice %1 {offsets = [16, 0], sizes = [256, 12], strides = [1, 1]} : vector<288x12xf32> to vector<256x12xf32>
    %c1 = arith.constant 1 : index
    %c0_5 = arith.constant 0 : index
    %c0_6 = arith.constant 0 : index
    %7 = vector.load %arg3[%c1, %c0_5, %c0_6] : memref<3x12x128xf32, #tpu.memory_space<vmem>>, vector<1x12x128xf32>
    %8 = vector.shape_cast %7 : vector<1x12x128xf32> to vector<12x128xf32>
    %cst_7 = arith.constant dense<0.000000e+00> : vector<256x128xf32>
    %9 = tpu.matmul %6, %8, %cst_7 {dimension_numbers = #tpu.dot_dimension_numbers<[1], [0], [0], [1], [0, 0, 1, 1], [], []>} : vector<256x12xf32>, vector<12x128xf32>, vector<256x128xf32> -> vector<256x128xf32>
    %10 = arith.addf %5, %9 : vector<256x128xf32>
    %11 = vector.extract_strided_slice %1 {offsets = [32, 0], sizes = [256, 12], strides = [1, 1]} : vector<288x12xf32> to vector<256x12xf32>
    %c2 = arith.constant 2 : index
    %c0_8 = arith.constant 0 : index
    %c0_9 = arith.constant 0 : index
    %12 = vector.load %arg3[%c2, %c0_8, %c0_9] : memref<3x12x128xf32, #tpu.memory_space<vmem>>, vector<1x12x128xf32>
    %13 = vector.shape_cast %12 : vector<1x12x128xf32> to vector<12x128xf32>
    %cst_10 = arith.constant dense<0.000000e+00> : vector<256x128xf32>
    %14 = tpu.matmul %11, %13, %cst_10 {dimension_numbers = #tpu.dot_dimension_numbers<[1], [0], [0], [1], [0, 0, 1, 1], [], []>} : vector<256x12xf32>, vector<12x128xf32>, vector<256x128xf32> -> vector<256x128xf32>
    %15 = arith.addf %10, %14 : vector<256x128xf32>
    %c0_11 = arith.constant 0 : index
    %c0_12 = arith.constant 0 : index
    %16 = vector.load %arg4[%c0_11, %c0_12] : memref<1x128xf32, #tpu.memory_space<vmem>>, vector<1x128xf32>
    %17 = vector.broadcast %16 : vector<1x128xf32> to vector<256x128xf32>
    %18 = arith.addf %15, %17 : vector<256x128xf32>
    %c0_i32 = arith.constant 0 : i32
    %19 = arith.cmpi eq, %arg0, %c0_i32 : i32
    %c0_i32_13 = arith.constant 0 : i32
    %20 = arith.cmpi eq, %arg1, %c0_i32_13 : i32
    %21 = arith.andi %19, %20 : i1
    %22 = arith.extui %21 : i1 to i32
    %c0_i32_14 = arith.constant 0 : i32
    %23 = arith.cmpi ne, %22, %c0_i32_14 : i32
    scf.if %23 {
      %cst_18 = arith.constant 0.000000e+00 : f32
      %30 = vector.broadcast %cst_18 : f32 to vector<1x128xf32>
      %c0_19 = arith.constant 0 : index
      %c0_20 = arith.constant 0 : index
      %31 = vector.load %arg8[%c0_19, %c0_20] : memref<1x128xf32, #tpu.memory_space<vmem>>, vector<1x128xf32>
      tpu.vector_store %arg8[%c0_19, %c0_20], %30 {strides = array<i32>} : memref<1x128xf32, #tpu.memory_space<vmem>>, vector<1x128xf32>,
      %cst_21 = arith.constant 0.000000e+00 : f32
      %32 = vector.broadcast %cst_21 : f32 to vector<1x128xf32>
      %c0_22 = arith.constant 0 : index
      %c0_23 = arith.constant 0 : index
      %33 = vector.load %arg9[%c0_22, %c0_23] : memref<1x128xf32, #tpu.memory_space<vmem>>, vector<1x128xf32>
      tpu.vector_store %arg9[%c0_22, %c0_23], %32 {strides = array<i32>} : memref<1x128xf32, #tpu.memory_space<vmem>>, vector<1x128xf32>,
    } else {
    }
    %c0_i32_15 = arith.constant 0 : i32
    %24 = arith.cmpi eq, %arg0, %c0_i32_15 : i32
    %25 = arith.extui %24 : i1 to i32
    %c0_i32_16 = arith.constant 0 : i32
    %26 = arith.cmpi ne, %25, %c0_i32_16 : i32
    scf.if %26 {
      %c0_18 = arith.constant 0 : index
      %c0_19 = arith.constant 0 : index
      %30 = vector.load %arg8[%c0_18, %c0_19] : memref<1x128xf32, #tpu.memory_space<vmem>>, vector<1x128xf32>
      %cst_20 = arith.constant dense<0.000000e+00> : vector<128xf32>
      %31 = vector.multi_reduction <add>, %18, %cst_20 [0] : vector<256x128xf32> to vector<128xf32>
      %32 = vector.shape_cast %31 : vector<128xf32> to vector<1x128xf32>
      %33 = arith.addf %30, %32 : vector<1x128xf32>
      %c0_21 = arith.constant 0 : index
      %c0_22 = arith.constant 0 : index
      %34 = vector.load %arg8[%c0_21, %c0_22] : memref<1x128xf32, #tpu.memory_space<vmem>>, vector<1x128xf32>
      tpu.vector_store %arg8[%c0_21, %c0_22], %33 {strides = array<i32>} : memref<1x128xf32, #tpu.memory_space<vmem>>, vector<1x128xf32>,
      %c0_23 = arith.constant 0 : index
      %c0_24 = arith.constant 0 : index
      %35 = vector.load %arg9[%c0_23, %c0_24] : memref<1x128xf32, #tpu.memory_space<vmem>>, vector<1x128xf32>
      %36 = arith.mulf %18, %18 : vector<256x128xf32>
      %cst_25 = arith.constant dense<0.000000e+00> : vector<128xf32>
      %37 = vector.multi_reduction <add>, %36, %cst_25 [0] : vector<256x128xf32> to vector<128xf32>
      %38 = vector.shape_cast %37 : vector<128xf32> to vector<1x128xf32>
      %39 = arith.addf %35, %38 : vector<1x128xf32>
      %c0_26 = arith.constant 0 : index
      %c0_27 = arith.constant 0 : index
      %40 = vector.load %arg9[%c0_26, %c0_27] : memref<1x128xf32, #tpu.memory_space<vmem>>, vector<1x128xf32>
      tpu.vector_store %arg9[%c0_26, %c0_27], %39 {strides = array<i32>} : memref<1x128xf32, #tpu.memory_space<vmem>>, vector<1x128xf32>,
      %c0_28 = arith.constant 0 : index
      %c0_29 = arith.constant 0 : index
      %c0_30 = arith.constant 0 : index
      %41 = vector.load %arg7[%c0_28, %c0_29, %c0_30] : memref<1x256x128xf32, #tpu.memory_space<vmem>>, vector<1x256x128xf32>
      %42 = vector.shape_cast %41 : vector<1x256x128xf32> to vector<256x128xf32>
      %43 = vector.shape_cast %18 : vector<256x128xf32> to vector<1x256x128xf32>
      tpu.vector_store %arg7[%c0_28, %c0_29, %c0_30], %43 {strides = array<i32>} : memref<1x256x128xf32, #tpu.memory_space<vmem>>, vector<1x256x128xf32>,
    } else {
    }
    %c1_i32 = arith.constant 1 : i32
    %27 = arith.cmpi eq, %arg0, %c1_i32 : i32
    %28 = arith.extui %27 : i1 to i32
    %c0_i32_17 = arith.constant 0 : i32
    %29 = arith.cmpi ne, %28, %c0_i32_17 : i32
    scf.if %29 {
      %c0_18 = arith.constant 0 : index
      %c0_19 = arith.constant 0 : index
      %30 = vector.load %arg8[%c0_18, %c0_19] : memref<1x128xf32, #tpu.memory_space<vmem>>, vector<1x128xf32>
      %cst_20 = arith.constant 0.001953125 : f32
      %31 = vector.broadcast %cst_20 : f32 to vector<1x128xf32>
      %32 = arith.mulf %30, %31 : vector<1x128xf32>
      %c0_21 = arith.constant 0 : index
      %c0_22 = arith.constant 0 : index
      %33 = vector.load %arg9[%c0_21, %c0_22] : memref<1x128xf32, #tpu.memory_space<vmem>>, vector<1x128xf32>
      %cst_23 = arith.constant 0.001953125 : f32
      %34 = vector.broadcast %cst_23 : f32 to vector<1x128xf32>
      %35 = arith.mulf %33, %34 : vector<1x128xf32>
      %36 = arith.mulf %32, %32 : vector<1x128xf32>
      %37 = arith.subf %35, %36 : vector<1x128xf32>
      %38 = vector.broadcast %32 : vector<1x128xf32> to vector<256x128xf32>
      %39 = arith.subf %18, %38 : vector<256x128xf32>
      %cst_24 = arith.constant 9.99999974E-6 : f32
      %40 = vector.broadcast %cst_24 : f32 to vector<1x128xf32>
      %41 = arith.addf %37, %40 : vector<1x128xf32>
      %42 = math.rsqrt %41 : vector<1x128xf32>
      %43 = vector.broadcast %42 : vector<1x128xf32> to vector<256x128xf32>
      %44 = arith.mulf %39, %43 : vector<256x128xf32>
      %c0_25 = arith.constant 0 : index
      %c0_26 = arith.constant 0 : index
      %45 = vector.load %arg5[%c0_25, %c0_26] : memref<1x128xf32, #tpu.memory_space<vmem>>, vector<1x128xf32>
      %46 = vector.broadcast %45 : vector<1x128xf32> to vector<256x128xf32>
      %47 = arith.mulf %44, %46 : vector<256x128xf32>
      %c0_27 = arith.constant 0 : index
      %c0_28 = arith.constant 0 : index
      %48 = vector.load %arg6[%c0_27, %c0_28] : memref<1x128xf32, #tpu.memory_space<vmem>>, vector<1x128xf32>
      %49 = vector.broadcast %48 : vector<1x128xf32> to vector<256x128xf32>
      %50 = arith.addf %47, %49 : vector<256x128xf32>
      %51 = math.tanh %50 : vector<256x128xf32>
      %c0_29 = arith.constant 0 : index
      %c0_30 = arith.constant 0 : index
      %c0_31 = arith.constant 0 : index
      %52 = vector.load %arg7[%c0_29, %c0_30, %c0_31] : memref<1x256x128xf32, #tpu.memory_space<vmem>>, vector<1x256x128xf32>
      %53 = vector.shape_cast %52 : vector<1x256x128xf32> to vector<256x128xf32>
      %54 = vector.shape_cast %51 : vector<256x128xf32> to vector<1x256x128xf32>
      tpu.vector_store %arg7[%c0_29, %c0_30, %c0_31], %54 {strides = array<i32>} : memref<1x256x128xf32, #tpu.memory_space<vmem>>, vector<1x256x128xf32>,
    } else {
    }
    return
  }
  func.func @transform_0(%arg0: i32, %arg1: i32) -> (i32, i32, i32) {
    %c0_i32 = arith.constant 0 : i32
    %c0_i32_0 = arith.constant 0 : i32
    %c0_i32_1 = arith.constant 0 : i32
    return %arg1, %c0_i32, %c0_i32_0 : i32, i32, i32
  }
  func.func @transform_1(%arg0: i32, %arg1: i32) -> (i32, i32, i32) {
    %c0_i32 = arith.constant 0 : i32
    %c0_i32_0 = arith.constant 0 : i32
    %c0_i32_1 = arith.constant 0 : i32
    %c0_i32_2 = arith.constant 0 : i32
    return %c0_i32, %c0_i32_0, %c0_i32_1 : i32, i32, i32
  }
  func.func @transform_2(%arg0: i32, %arg1: i32) -> (i32, i32) {
    %c0_i32 = arith.constant 0 : i32
    %c0_i32_0 = arith.constant 0 : i32
    %c0_i32_1 = arith.constant 0 : i32
    return %c0_i32, %c0_i32_0 : i32, i32
  }
  func.func @transform_3(%arg0: i32, %arg1: i32) -> (i32, i32) {
    %c0_i32 = arith.constant 0 : i32
    %c0_i32_0 = arith.constant 0 : i32
    %c0_i32_1 = arith.constant 0 : i32
    return %c0_i32, %c0_i32_0 : i32, i32
  }
  func.func @transform_4(%arg0: i32, %arg1: i32) -> (i32, i32) {
    %c0_i32 = arith.constant 0 : i32
    %c0_i32_0 = arith.constant 0 : i32
    %c0_i32_1 = arith.constant 0 : i32
    return %c0_i32, %c0_i32_0 : i32, i32
  }
  func.func @transform_5(%arg0: i32, %arg1: i32) -> (i32, i32, i32) {
    %c0_i32 = arith.constant 0 : i32
    %c0_i32_0 = arith.constant 0 : i32
    %c0_i32_1 = arith.constant 0 : i32
    return %arg1, %c0_i32, %c0_i32_0 : i32, i32, i32
  }
}

</mosaic_0001>

<bundles_post_ra>
// kernel: tpu_custom_call.1
= control target key start
LH: loop header
LB: loop body
LE: loop exit
PB: predicated region body
PF: predicated region fallthrough
CT: control target
= control target key end

     0   :  { %s2591_s0 = inlined_call_operand.vmem [shape: f32[2,288,12], index: 0, kind: input, shape index: {}]   ;;  %s2592_s1 = inlined_call_operand.vmem [shape: f32[3,12,128], index: 1, kind: input, shape index: {}]   ;;  %s2593_s2 = inlined_call_operand.vmem [shape: f32[1,128], index: 2, kind: input, shape index: {}]   ;;  %s2594_s3 = inlined_call_operand.vmem [shape: f32[1,128], index: 3, kind: input, shape index: {}]   ;;  %s2595_s4 = inlined_call_operand.vmem [shape: f32[1,128], index: 4, kind: input, shape index: {}]   ;;  %s2596_s5 = inlined_call_operand.hbm [shape: f32[2,256,128], index: 5, kind: output, shape index: {}]  }
   0x1   :  { %2597 = sst [smem:[#allocation7_spill]] %s2591_s0 }
   0x2   :  { %10 = vsyncpa [#allocation5], 0 }
   0x3   :  { %12 = vsyncpa [#allocation5 + $0x1], 0  ;;  %s1673_s18 = smov 0   ;;  %s1675_s19 = smov 0  }
   0x4   :  { %s1677_s20 = smov 0   ;;  %s1679_s21 = smov 0  }
   0x5   :  { %s1681_s22 = smov 0   ;;  %s1683_s23 = smov 0  }
   0x6   :  { %s1685_s24 = smov 0   ;;  %s1687_s25 = smov 0  }
   0x7 LB: > { %s1276_s26 = sadd.s32 4294967295, %s1638_s25   ;;  %s1277_s27 = sadd.s32 4294967294, %s1638_s25   ;;  %s1638_s25 = sphi %s1687_s25, %s18_s25   ;;  %s1634_s24 = sphi %s1685_s24, %s2610_s24   ;;  %s1630_s23 = sphi %s1683_s23, %s2609_s23   ;;  %s1626_s22 = sphi %s1681_s22, %s2608_s22   ;;  %s1622_s21 = sphi %s1679_s21, %s2607_s21   ;;  %s1618_s20 = sphi %s1677_s20, %s2606_s20   ;;  %s1614_s19 = sphi %s1675_s19, %s2605_s19   ;;  %s1610_s18 = sphi %s1673_s18, %s2604_s18  }
   0x8   : > { %s27_s28 = sadd.s32 1, %s1630_s23  ;;  %s30_s29 = sadd.s32 1, %s1634_s24 }
   0x9   : > { %p28_p0 = scmp.ge.s32.totalorder %s27_s28, 2  ;;  %s147_s30 = sadd.s32 1, %s1618_s20 }
   0xa   : > { %p157_p1 = scmp.ne.s32.totalorder %s1618_s20, %s1614_s19  ;;  %p158_p2 = scmp.eq.s32.totalorder %s1276_s26, 3 }
   0xb   : > { %s2612_s28 = smov (%p28_p0, %s27_s28), 0  ;;  %s2614_s29 = smov (!%p28_p0, %s30_s29), %s1634_s24 }
   0xc   : > { %s144_s6 = ssub.s32 %s1630_s23, %s2612_s28  ;;  %p1725_p3 = por %p158_p2, %p157_p1 }
   0xd   : > { %p32_p4 = scmp.ge.s32.totalorder %s2614_s29, 2  ;;  %p145_p5 = scmp.eq.s32.totalorder %s144_s6, 0 }
   0xe   : > { %p163_p6 = scmp.ne.s32.totalorder %s1614_s19, %s1610_s18  ;;  %p164_p7 = scmp.eq.s32.totalorder %s1277_s27, 3 }
   0xf   : > { %s2616_s29 = smov (%p32_p4, %s2614_s29), 0  ;;  %p1280_p9 = scmp.ge.s32.totalorder %s1638_s25, 1 }
  0x10   : > { %s1734_s8 = scalar_select %p145_p5, %s1618_s20, %s147_s30  }
  0x11   : > { %p1736_p8 = por %p164_p7, %p163_p6  ;;  %p202_p10 = scmp.lt.s32.totalorder %s1638_s25, 5 }
  0x13   : > { %p203_p11 = pnand %p1280_p9, %p202_p10 }
  0x14   : > { %p230_p12 = scmp.lt.s32.totalorder (!%p203_p11), %s1622_s21, 1  ;;  %s227_s30 = sand.u32 (!%p203_p11), 1, %s1614_s19  }
  0x15   : > { %206 = sbr.rel (%p203_p11) target bundleno = 539 (0x21b), region = 40  ;;  %s1763_s6 = sshll.u32 (!%p203_p11), %s227_s30, 8 }
  0x16   : > { %s2600_s0 = sld [smem:[#allocation7_spill]] (!%p203_p11)  ;;  %p805_p13 = scmp.eq.s32.totalorder (!%p203_p11), %s1626_s22, 0 }
  0x17   : > { %p806_p0 = scmp.eq.s32.totalorder (!%p203_p11), %s1622_s21, 0  ;;  %s2114_s10 = scalar_lea.vmem (!%p203_p11), [#allocation4], %s1763_s6 }
  0x19   : > { %p2005_p1 = pnand (!%p203_p11), %p806_p0, %p805_p13 }
  0x1a   : > { %v1284_v0 = vld [vmem:[%s2592_s1 + $0x18] sm:$0xf]  ;;  %vm373_vm0 = vcmask 1043456   ;;  %v1352_v1 = vld [vmem:[%s2592_s1 + $0x28] sm:$0xf]  ;;  %v1283_v2 = vld [vmem:[%s2592_s1 + $0x10] sm:$0xff] }
  0x1b   : > { %1394 = vmatpush.msk.msra.mxu3 %vm373_vm0, %v1284_v0  ;;  %1353 = vmatpush.msk.msra.mxu2 %vm373_vm0, %v1352_v1  ;;  %v1351_v3 = vld [vmem:[%s2592_s1 + $0x20] sm:$0xff]  ;;  %v272_v4 = vld [vmem:[%s2592_s1 + $0x8] sm:$0xf]  ;;  %s231_s12 = scalar_select %p230_p12, %s1622_s21, 1  ;;  %vm276_vm1 = vcmask 97280  }
  0x1c   : > { %1285 = vmatpush.msk.msra.mxu0 %vm373_vm0, %v1284_v0  ;;  %1318 = vmatpush.msk.msra.mxu1 %vm373_vm0, %v272_v4  ;;  %v271_v5 = vld [vmem:[%s2592_s1] sm:$0xff] }
  0x1d   : > { %1395 = vmatpush.msra.mxu3 %v1283_v2  ;;  %639 = vmatpush.msra.mxu2 %v1351_v3  ;;  %s1400_s13 = smul.u32 288, %s231_s12  ;;  %v1917_v40 = vld [vmem:[%s2593_s2] ss:$0 sm:$0xff] }
  0x1e   : > { %392 = vmatpush.msra.mxu0 %v1283_v2  ;;  %514 = vmatpush.msra.mxu1 %v271_v5 }
  0x1f   : > { %1396 = vmatpush.msk.msrb.mxu3 %vm373_vm0, %v272_v4  ;;  %s1775_s16 = scalar_lea.vmem %s2600_s0, %s1400_s13 }
  0x20   : > { %v1778_v6 = vld [vmem:[%s1775_s16 + $0xd0] sm:$0xff]  ;;  %v239_v7 = vld [vmem:[%s1775_s16 + $0x20] sm:$0xff]  ;;  %v1790_v10 = vld [vmem:[%s1775_s16 + $0xd8] sm:$0xff] }
  0x21   : > { %1397 = vmatpush.msrb.mxu3 %v271_v5  ;;  %v237_v8 = vld [vmem:[%s1775_s16 + $0x10] sm:$0xff]  ;;  %1354 = vmatmul.msk.f32.vlgmr.msra.gmra.mxu2 %vm276_vm1, %v239_v7  ;;  %v235_v9 = vld [vmem:[%s1775_s16] sm:$0xff]  ;;  %v240_v11 = vld [vmem:[%s1775_s16 + $0x28] sm:$0xff] }
  0x22   : > { %1310 = vmatmul.msk.f32.vlgmr.msra.gmra.mxu3 %vm276_vm1, %v1778_v6  ;;  %1286 = vmatmul.msk.f32.vlgmr.msra.gmra.mxu0 %vm276_vm1, %v237_v8  ;;  %v238_v12 = vld [vmem:[%s1775_s16 + $0x18] sm:$0xff]  ;;  %v236_v13 = vld [vmem:[%s1775_s16 + $0x8] sm:$0xff]  ;;  %v1801_v14 = vld [vmem:[%s1775_s16 + $0xe0] sm:$0xff] }
  0x23   : > { %1319 = vmatmul.msk.f32.vlgmr.msra.gmra.mxu1 %vm276_vm1, %v235_v9  ;;  %1398 = vmatpush.msk.msra.mxu3 %vm373_vm0, %v1352_v1  ;;  %v241_v15 = vld [vmem:[%s1775_s16 + $0x30] sm:$0xff]  ;;  %v1810_v16 = vld [vmem:[%s1775_s16 + $0xe8] sm:$0xff]  ;;  %v242_v17 = vld [vmem:[%s1775_s16 + $0x38] sm:$0xff] }
  0x24   : > { %v1819_v18 = vld [vmem:[%s1775_s16 + $0xf0] sm:$0xff]  ;;  %v243_v19 = vld [vmem:[%s1775_s16 + $0x40] sm:$0xff]  ;;  %v1828_v20 = vld [vmem:[%s1775_s16 + $0xf8] sm:$0xff] }
  0x25   : > { %1399 = vmatpush.msra.mxu3 %v1351_v3  ;;  %v244_v21 = vld [vmem:[%s1775_s16 + $0x48] sm:$0xff]  ;;  %v1837_v22 = vld [vmem:[%s1775_s16 + $0x100] sm:$0xff]  ;;  %v245_v23 = vld [vmem:[%s1775_s16 + $0x50] sm:$0xff] }
  0x26   : > { %v1846_v24 = vld [vmem:[%s1775_s16 + $0x108] sm:$0xff]  ;;  %v246_v25 = vld [vmem:[%s1775_s16 + $0x58] sm:$0xff]  ;;  %v1855_v26 = vld [vmem:[%s1775_s16 + $0xc0] sm:$0xff] }
  0x27   : > { %v247_v27 = vld [vmem:[%s1775_s16 + $0x60] sm:$0xff]  ;;  %v1864_v28 = vld [vmem:[%s1775_s16 + $0xc8] sm:$0xff]  ;;  %v249_v30 = vld [vmem:[%s1775_s16 + $0x70] sm:$0xff] }
  0x28   : > { %v248_v29 = vld [vmem:[%s1775_s16 + $0x68] sm:$0xff]  ;;  %v250_v31 = vld [vmem:[%s1775_s16 + $0x78] sm:$0xff]  ;;  %v251_v32 = vld [vmem:[%s1775_s16 + $0x80] sm:$0xff] }
  0x29   : > { %1355 = vmatmul.msk.f32.gmra.mxu2 %vm276_vm1, %v240_v11  ;;  %v252_v33 = vld [vmem:[%s1775_s16 + $0x88] sm:$0xff]  ;;  %v253_v34 = vld [vmem:[%s1775_s16 + $0x90] sm:$0xff]  ;;  %v254_v35 = vld [vmem:[%s1775_s16 + $0x98] sm:$0xff] }
  0x2a   : > { %1311 = vmatmul.msk.f32.gmra.mxu3 %vm276_vm1, %v1790_v10  ;;  %1287 = vmatmul.msk.f32.gmra.mxu0 %vm276_vm1, %v238_v12  ;;  %v255_v36 = vld [vmem:[%s1775_s16 + $0xa0] sm:$0xff]  ;;  %v256_v44 = vld [vmem:[%s1775_s16 + $0xa8] sm:$0xff]  ;;  %v257_v52 = vld [vmem:[%s1775_s16 + $0xb0] sm:$0xff] }
  0x2b   : > { %1320 = vmatmul.msk.f32.gmra.mxu1 %vm276_vm1, %v236_v13  ;;  %v258_v60 = vld [vmem:[%s1775_s16 + $0xb8] sm:$0xff] }
  0x31   : > { %1356 = vmatmul.msk.f32.gmra.mxu2 %vm276_vm1, %v241_v15 }
  0x32   : > { %1312 = vmatmul.msk.f32.gmra.mxu3 %vm276_vm1, %v1801_v14  ;;  %1288 = vmatmul.msk.f32.gmra.mxu0 %vm276_vm1, %v239_v7 }
  0x33   : > { %1321 = vmatmul.msk.f32.gmra.mxu1 %vm276_vm1, %v237_v8 }
  0x39   : > { %1357 = vmatmul.msk.f32.gmra.mxu2 %vm276_vm1, %v242_v17 }
  0x3a   : > { %1313 = vmatmul.msk.f32.gmra.mxu3 %vm276_vm1, %v1810_v16  ;;  %1289 = vmatmul.msk.f32.gmra.mxu0 %vm276_vm1, %v240_v11 }
  0x3b   : > { %1322 = vmatmul.msk.f32.gmra.mxu1 %vm276_vm1, %v238_v12 }
  0x41   : > { %1358 = vmatmul.msk.f32.gmra.mxu2 %vm276_vm1, %v243_v19 }
  0x42   : > { %1314 = vmatmul.msk.f32.gmra.mxu3 %vm276_vm1, %v1819_v18  ;;  %1290 = vmatmul.msk.f32.gmra.mxu0 %vm276_vm1, %v241_v15 }
  0x43   : > { %1323 = vmatmul.msk.f32.gmra.mxu1 %vm276_vm1, %v239_v7 }
  0x49   : > { %1359 = vmatmul.msk.f32.gmra.mxu2 %vm276_vm1, %v244_v21 }
  0x4a   : > { %1315 = vmatmul.msk.f32.gmra.mxu3 %vm276_vm1, %v1828_v20  ;;  %1291 = vmatmul.msk.f32.gmra.mxu0 %vm276_vm1, %v242_v17 }
  0x4b   : > { %1324 = vmatmul.msk.f32.gmra.mxu1 %vm276_vm1, %v240_v11 }
  0x51   : > { %1360 = vmatmul.msk.f32.gmra.mxu2 %vm276_vm1, %v245_v23 }
  0x52   : > { %1316 = vmatmul.msk.f32.gmra.mxu3 %vm276_vm1, %v1837_v22  ;;  %1292 = vmatmul.msk.f32.gmra.mxu0 %vm276_vm1, %v243_v19 }
  0x53   : > { %1325 = vmatmul.msk.f32.gmra.mxu1 %vm276_vm1, %v241_v15 }
  0x59   : > { %1361 = vmatmul.msk.f32.gmra.mxu2 %vm276_vm1, %v246_v25 }
  0x5a   : > { %1317 = vmatmul.msk.f32.gmra.mxu3 %vm276_vm1, %v1846_v24  ;;  %1293 = vmatmul.msk.f32.gmra.mxu0 %vm276_vm1, %v244_v21 }
  0x5b   : > { %1326 = vmatmul.msk.f32.gmra.mxu1 %vm276_vm1, %v242_v17 }
  0x61   : > { %1362 = vmatmul.msk.f32.gmra.mxu2 %vm276_vm1, %v247_v27 }
  0x62   : > { %1343 = vmatmul.msk.f32.vlgmr.msrb.gmra.mxu3 %vm276_vm1, %v1855_v26  ;;  %1294 = vmatmul.msk.f32.gmra.mxu0 %vm276_vm1, %v245_v23 }
  0x63   : > { %1327 = vmatmul.msk.f32.gmra.mxu1 %vm276_vm1, %v243_v19 }
  0x69   : > { %1363 = vmatmul.msk.f32.gmra.mxu2 %vm276_vm1, %v248_v29 }
  0x6a   : > { %1344 = vmatmul.msk.f32.gmra.mxu3 %vm276_vm1, %v1864_v28  ;;  %1295 = vmatmul.msk.f32.gmra.mxu0 %vm276_vm1, %v246_v25 }
  0x6b   : > { %1328 = vmatmul.msk.f32.gmra.mxu1 %vm276_vm1, %v244_v21 }
  0x71   : > { %1364 = vmatmul.msk.f32.gmra.mxu2 %vm276_vm1, %v249_v30 }
  0x72   : > { %1345 = vmatmul.msk.f32.gmra.mxu3 %vm276_vm1, %v1778_v6  ;;  %1296 = vmatmul.msk.f32.gmra.mxu0 %vm276_vm1, %v247_v27 }
  0x73   : > { %1329 = vmatmul.msk.f32.gmra.mxu1 %vm276_vm1, %v245_v23 }
  0x79   : > { %1365 = vmatmul.msk.f32.gmra.mxu2 %vm276_vm1, %v250_v31 }
  0x7a   : > { %1346 = vmatmul.msk.f32.gmra.mxu3 %vm276_vm1, %v1790_v10  ;;  %1297 = vmatmul.msk.f32.gmra.mxu0 %vm276_vm1, %v248_v29 }
  0x7b   : > { %1330 = vmatmul.msk.f32.gmra.mxu1 %vm276_vm1, %v246_v25 }
  0x81   : > { %1366 = vmatmul.msk.f32.gmra.mxu2 %vm276_vm1, %v251_v32 }
  0x82   : > { %1347 = vmatmul.msk.f32.gmra.mxu3 %vm276_vm1, %v1801_v14  ;;  %1298 = vmatmul.msk.f32.gmra.mxu0 %vm276_vm1, %v249_v30 }
  0x83   : > { %1331 = vmatmul.msk.f32.gmra.mxu1 %vm276_vm1, %v247_v27 }
  0x89   : > { %1367 = vmatmul.msk.f32.gmra.mxu2 %vm276_vm1, %v252_v33 }
  0x8a   : > { %1348 = vmatmul.msk.f32.gmra.mxu3 %vm276_vm1, %v1810_v16  ;;  %1299 = vmatmul.msk.f32.gmra.mxu0 %vm276_vm1, %v250_v31 }
  0x8b   : > { %1332 = vmatmul.msk.f32.gmra.mxu1 %vm276_vm1, %v248_v29 }
  0x91   : > { %1368 = vmatmul.msk.f32.gmra.mxu2 %vm276_vm1, %v253_v34 }
  0x92   : > { %1349 = vmatmul.msk.f32.gmra.mxu3 %vm276_vm1, %v1819_v18  ;;  %1300 = vmatmul.msk.f32.gmra.mxu0 %vm276_vm1, %v251_v32 }
  0x93   : > { %1333 = vmatmul.msk.f32.gmra.mxu1 %vm276_vm1, %v249_v30  ;;  %v270_v30 = vld [vmem:[%s1775_s16 + $0x118] sm:$0xff] }
  0x99   : > { %1369 = vmatmul.msk.f32.gmra.mxu2 %vm276_vm1, %v254_v35 }
  0x9a   : > { %1350 = vmatmul.msk.f32.gmra.mxu3 %vm276_vm1, %v1828_v20  ;;  %1301 = vmatmul.msk.f32.gmra.mxu0 %vm276_vm1, %v252_v33 }
  0x9b   : > { %1334 = vmatmul.msk.f32.gmra.mxu1 %vm276_vm1, %v250_v31 }
  0x9f   : > { %v394_v37 = vpop.f32.mrf.mxu0 }
  0xa0   : > { %v516_v38 = vpop.f32.mrf.mxu1 }
  0xa1   : > { %v517_v39 = vadd.f32 %v516_v38, %v394_v37  ;;  %1370 = vmatmul.msk.f32.gmra.mxu2 %vm276_vm1, %v255_v36 }
  0xa2   : > { %1378 = vmatmul.msk.f32.vlgmr.msra.gmra.mxu3 %vm276_vm1, %v1801_v14  ;;  %1302 = vmatmul.msk.f32.gmra.mxu0 %vm276_vm1, %v253_v34 }
  0xa3   : > { %1335 = vmatmul.msk.f32.gmra.mxu1 %vm276_vm1, %v251_v32 }
  0xa4   : > { %v641_v42 = vpop.f32.mrf.mxu2 }
  0xa5   : > { %v1919_v41 = vpop.f32.mrf.mxu3  ;;  %v737_v43 = vadd.f32 %v641_v42, %v517_v39 }
  0xa7   : > { %v1923_v45 = vadd.f32 %v1917_v40, %v737_v43  ;;  %v397_v46 = vpop.f32.mrf.mxu0 }
  0xa8   : > { %v519_v47 = vpop.f32.mrf.mxu1 }
  0xa9   : > { %v520_v48 = vadd.f32 %v519_v47, %v397_v46  ;;  %1371 = vmatmul.msk.f32.gmra.mxu2 %vm276_vm1, %v256_v44 }
  0xaa   : > { %1379 = vmatmul.msk.f32.gmra.mxu3 %vm276_vm1, %v1810_v16  ;;  %1303 = vmatmul.msk.f32.gmra.mxu0 %vm276_vm1, %v254_v35 }
  0xab   : > { %1336 = vmatmul.msk.f32.gmra.mxu1 %vm276_vm1, %v252_v33 }
  0xac   : > { %v644_v50 = vpop.f32.mrf.mxu2 }
  0xad   : > { %v1930_v49 = vpop.f32.mrf.mxu3  ;;  %v738_v51 = vadd.f32 %v644_v50, %v520_v48 }
  0xaf   : > { %v1934_v53 = vadd.f32 %v1917_v40, %v738_v51  ;;  %v400_v54 = vpop.f32.mrf.mxu0 }
  0xb0   : > { %v522_v55 = vpop.f32.mrf.mxu1 }
  0xb1   : > { %v523_v56 = vadd.f32 %v522_v55, %v400_v54  ;;  %1372 = vmatmul.msk.f32.gmra.mxu2 %vm276_vm1, %v257_v52 }
  0xb2   : > { %1380 = vmatmul.msk.f32.gmra.mxu3 %vm276_vm1, %v1819_v18  ;;  %1304 = vmatmul.msk.f32.gmra.mxu0 %vm276_vm1, %v255_v36 }
  0xb3   : > { %1337 = vmatmul.msk.f32.gmra.mxu1 %vm276_vm1, %v253_v34 }
  0xb4   : > { %v647_v58 = vpop.f32.mrf.mxu2 }
  0xb5   : > { %v1941_v57 = vpop.f32.mrf.mxu3  ;;  %v739_v59 = vadd.f32 %v647_v58, %v523_v56 }
  0xb7   : > { %v1945_v61 = vadd.f32 %v1917_v40, %v739_v59  ;;  %v403_v62 = vpop.f32.mrf.mxu0 }
  0xb8   : > { %v525_v63 = vpop.f32.mrf.mxu1 }
  0xb9   : > { %v526_v0 = vadd.f32 %v525_v63, %v403_v62  ;;  %1373 = vmatmul.msk.f32.gmra.mxu2 %vm276_vm1, %v258_v60 }
  0xba   : > { %1381 = vmatmul.msk.f32.gmra.mxu3 %vm276_vm1, %v1828_v20  ;;  %1305 = vmatmul.msk.f32.gmra.mxu0 %vm276_vm1, %v256_v44  ;;  %v269_v20 = vld [vmem:[%s1775_s16 + $0x110] sm:$0xff] }
  0xbb   : > { %1338 = vmatmul.msk.f32.gmra.mxu1 %vm276_vm1, %v254_v35 }
  0xbc   : > { %v650_v2 = vpop.f32.mrf.mxu2 }
  0xbd   : > { %v1952_v1 = vpop.f32.mrf.mxu3  ;;  %v740_v3 = vadd.f32 %v650_v2, %v526_v0 }
  0xbf   : > { %v1955_v4 = vadd.f32 %v1917_v40, %v740_v3  ;;  %v406_v5 = vpop.f32.mrf.mxu0 }
  0xc0   : > { %v528_v7 = vpop.f32.mrf.mxu1 }
  0xc1   : > { %v529_v8 = vadd.f32 %v528_v7, %v406_v5  ;;  %1374 = vmatmul.msk.f32.gmra.mxu2 %vm276_vm1, %v1855_v26 }
  0xc2   : > { %1382 = vmatmul.msk.f32.gmra.mxu3 %vm276_vm1, %v1837_v22  ;;  %1306 = vmatmul.msk.f32.gmra.mxu0 %vm276_vm1, %v257_v52 }
  0xc3   : > { %1339 = vmatmul.msk.f32.gmra.mxu1 %vm276_vm1, %v255_v36 }
  0xc4   : > { %v653_v11 = vpop.f32.mrf.mxu2 }
  0xc5   : > { %v1963_v9 = vpop.f32.mrf.mxu3  ;;  %v741_v12 = vadd.f32 %v653_v11, %v529_v8 }
  0xc7   : > { %v1966_v13 = vadd.f32 %v1917_v40, %v741_v12  ;;  %v409_v14 = vpop.f32.mrf.mxu0 }
  0xc8   : > { %v531_v15 = vpop.f32.mrf.mxu1 }
  0xc9   : > { %v532_v16 = vadd.f32 %v531_v15, %v409_v14  ;;  %1375 = vmatmul.msk.f32.gmra.mxu2 %vm276_vm1, %v1864_v28 }
  0xca   : > { %1383 = vmatmul.msk.f32.gmra.mxu3 %vm276_vm1, %v1846_v24  ;;  %1307 = vmatmul.msk.f32.gmra.mxu0 %vm276_vm1, %v258_v60 }
  0xcb   : > { %1340 = vmatmul.msk.f32.gmra.mxu1 %vm276_vm1, %v256_v44 }
  0xcc   : > { %v656_v18 = vpop.f32.mrf.mxu2 }
  0xcd   : > { %v1974_v17 = vpop.f32.mrf.mxu3  ;;  %v742_v19 = vadd.f32 %v656_v18, %v532_v16 }
  0xcf   : > { %v1978_v21 = vadd.f32 %v1917_v40, %v742_v19  ;;  %v412_v22 = vpop.f32.mrf.mxu0 }
  0xd0   : > { %v534_v23 = vpop.f32.mrf.mxu1 }
  0xd1   : > { %v535_v25 = vadd.f32 %v534_v23, %v412_v22  ;;  %1376 = vmatmul.msk.f32.gmra.mxu2 %vm276_vm1, %v1778_v6 }
  0xd2   : > { %1384 = vmatmul.msk.f32.gmra.mxu3 %vm276_vm1, %v269_v20  ;;  %1308 = vmatmul.msk.f32.gmra.mxu0 %vm276_vm1, %v1855_v26 }
  0xd3   : > { %1341 = vmatmul.msk.f32.gmra.mxu1 %vm276_vm1, %v257_v52 }
  0xd4   : > { %v659_v27 = vpop.f32.mrf.mxu2 }
  0xd5   : > { %v1986_v24 = vpop.f32.mrf.mxu3  ;;  %v743_v29 = vadd.f32 %v659_v27, %v535_v25 }
  0xd7   : > { %v1990_v31 = vadd.f32 %v1917_v40, %v743_v29  ;;  %v415_v32 = vpop.f32.mrf.mxu0 }
  0xd8   : > { %v537_v33 = vpop.f32.mrf.mxu1 }
  0xd9   : > { %v538_v6 = vadd.f32 %v537_v33, %v415_v32  ;;  %1377 = vmatmul.msk.f32.gmra.mxu2 %vm276_vm1, %v1790_v10 }
  0xda   : > { %1385 = vmatmul.msk.f32.gmra.mxu3 %vm276_vm1, %v270_v30  ;;  %1309 = vmatmul.msk.f32.gmra.mxu0 %vm276_vm1, %v1864_v28 }
  0xdb   : > { %1342 = vmatmul.msk.f32.gmra.mxu1 %vm276_vm1, %v258_v60 }
  0xdc   : > { %v662_v34 = vpop.f32.mrf.mxu2 }
  0xdd   : > { %v1998_v26 = vpop.f32.mrf.mxu3  ;;  %v744_v35 = vadd.f32 %v662_v34, %v538_v6 }
  0xdf   : > { %v2003_v36 = vadd.f32 %v1917_v40, %v744_v35  ;;  %v418_v37 = vpop.f32.mrf.mxu0 }
  0xe0   : > { %v540_v38 = vpop.f32.mrf.mxu1 }
  0xe1   : > { %v541_v10 = vadd.f32 %v540_v38, %v418_v37 }
  0xe4   : > { %v665_v28 = vpop.f32.mrf.mxu2 }
  0xe5   : > { %v588_v39 = vpop.f32.mrf.mxu3  ;;  %v745_v43 = vadd.f32 %v665_v28, %v541_v10 }
  0xe6   : > { %v2010_v42 = vadd.f32 %v588_v39, %v1919_v41 }
  0xe7   : > { %v2013_v44 = vadd.f32 %v1917_v40, %v745_v43  ;;  %v421_v46 = vpop.f32.mrf.mxu0 }
  0xe8   : > { %v543_v47 = vpop.f32.mrf.mxu1 }
  0xe9   : > { %v544_v48 = vadd.f32 %v543_v47, %v421_v46 }
  0xec   : > { %v668_v51 = vpop.f32.mrf.mxu2 }
  0xed   : > { %v591_v50 = vpop.f32.mrf.mxu3  ;;  %v746_v54 = vadd.f32 %v668_v51, %v544_v48 }
  0xee   : > { %v2016_v52 = vadd.f32 %v591_v50, %v1930_v49 }
  0xef   : > { %v2019_v55 = vadd.f32 %v1917_v40, %v746_v54  ;;  %v424_v56 = vpop.f32.mrf.mxu0 }
  0xf0   : > { %v546_v58 = vpop.f32.mrf.mxu1 }
  0xf1   : > { %v547_v41 = vadd.f32 %v546_v58, %v424_v56 }
  0xf4   : > { %v671_v60 = vpop.f32.mrf.mxu2 }
  0xf5   : > { %v594_v59 = vpop.f32.mrf.mxu3  ;;  %v747_v63 = vadd.f32 %v671_v60, %v547_v41 }
  0xf6   : > { %v2022_v62 = vadd.f32 %v594_v59, %v1941_v57 }
  0xf7   : > { %v2025_v0 = vadd.f32 %v1917_v40, %v747_v63  ;;  %v427_v2 = vpop.f32.mrf.mxu0 }
  0xf8   : > { %v549_v3 = vpop.f32.mrf.mxu1 }
  0xf9   : > { %v550_v49 = vadd.f32 %v549_v3, %v427_v2 }
  0xfc   : > { %v674_v7 = vpop.f32.mrf.mxu2 }
  0xfd   : > { %v597_v5 = vpop.f32.mrf.mxu3  ;;  %v748_v11 = vadd.f32 %v674_v7, %v550_v49 }
  0xfe   : > { %v2028_v8 = vadd.f32 %v597_v5, %v1952_v1 }
  0xff   : > { %v2031_v12 = vadd.f32 %v1917_v40, %v748_v11  ;;  %v430_v14 = vpop.f32.mrf.mxu0 }
 0x100   : > { %v552_v15 = vpop.f32.mrf.mxu1 }
 0x101   : > { %v553_v57 = vadd.f32 %v552_v15, %v430_v14 }
 0x104   : > { %v677_v18 = vpop.f32.mrf.mxu2 }
 0x105   : > { %v600_v16 = vpop.f32.mrf.mxu3  ;;  %v749_v20 = vadd.f32 %v677_v18, %v553_v57 }
 0x106   : > { %v2034_v19 = vadd.f32 %v600_v16, %v1963_v9 }
 0x107   : > { %v2037_v22 = vadd.f32 %v1917_v40, %v749_v20  ;;  %v433_v23 = vpop.f32.mrf.mxu0 }
 0x108   : > { %v555_v25 = vpop.f32.mrf.mxu1 }
 0x109   : > { %v556_v1 = vadd.f32 %v555_v25, %v433_v23 }
 0x10c   : > { %v680_v29 = vpop.f32.mrf.mxu2 }
 0x10d   : > { %v603_v27 = vpop.f32.mrf.mxu3  ;;  %v750_v32 = vadd.f32 %v680_v29, %v556_v1 }
 0x10e   : > { %v2040_v30 = vadd.f32 %v603_v27, %v1974_v17 }
 0x10f   : > { %v2043_v33 = vadd.f32 %v1917_v40, %v750_v32  ;;  %v436_v6 = vpop.f32.mrf.mxu0 }
 0x110   : > { %v558_v34 = vpop.f32.mrf.mxu1 }
 0x111   : > { %v559_v9 = vadd.f32 %v558_v34, %v436_v6 }
 0x114   : > { %v683_v37 = vpop.f32.mrf.mxu2 }
 0x115   : > { %v606_v35 = vpop.f32.mrf.mxu3  ;;  %v751_v10 = vadd.f32 %v683_v37, %v559_v9 }
 0x116   : > { %v2046_v38 = vadd.f32 %v606_v35, %v1986_v24 }
 0x117   : > { %v2049_v39 = vadd.f32 %v1917_v40, %v751_v10  ;;  %v439_v28 = vpop.f32.mrf.mxu0 }
 0x118   : > { %v561_v43 = vpop.f32.mrf.mxu1 }
 0x119   : > { %v562_v17 = vadd.f32 %v561_v43, %v439_v28 }
 0x11c   : > { %v686_v47 = vpop.f32.mrf.mxu2 }
 0x11d   : > { %v2051_v46 = vpop.f32.mrf.mxu3  ;;  %v752_v48 = vadd.f32 %v686_v47, %v562_v17 }
 0x11f   : > { %v2054_v50 = vadd.f32 %v1917_v40, %v752_v48  ;;  %v442_v51 = vpop.f32.mrf.mxu0 }
 0x120   : > { %v564_v54 = vpop.f32.mrf.mxu1 }
 0x121   : > { %v565_v56 = vadd.f32 %v564_v54, %v442_v51 }
 0x124   : > { %v689_v58 = vpop.f32.mrf.mxu2 }
 0x125   : > { %v713_v24 = vpop.f32.mrf.mxu3  ;;  %v753_v41 = vadd.f32 %v689_v58, %v565_v56 }
 0x126   : > { %v761_v59 = vadd.f32 %v713_v24, %v2010_v42 }
 0x127   : > { %v2058_v60 = vadd.f32 %v1917_v40, %v753_v41  ;;  %v445_v2 = vpop.f32.mrf.mxu0 }
 0x128   : > { %v2061_v63 = vadd.f32 %v1917_v40, %v761_v59  ;;  %v567_v3 = vpop.f32.mrf.mxu1 }
 0x129   : > { %v568_v49 = vadd.f32 %v567_v3, %v445_v2 }
 0x12c   : > { %v692_v5 = vpop.f32.mrf.mxu2 }
 0x12d   : > { %v716_v7 = vpop.f32.mrf.mxu3  ;;  %v754_v11 = vadd.f32 %v692_v5, %v568_v49 }
 0x12e   : > { %v762_v14 = vadd.f32 %v716_v7, %v2016_v52 }
 0x12f   : > { %v2065_v15 = vadd.f32 %v1917_v40, %v754_v11  ;;  %v448_v42 = vpop.f32.mrf.mxu0 }
 0x130   : > { %v2068_v57 = vadd.f32 %v1917_v40, %v762_v14  ;;  %v570_v16 = vpop.f32.mrf.mxu1 }
 0x131   : > { %v571_v18 = vadd.f32 %v570_v16, %v448_v42 }
 0x134   : > { %v695_v20 = vpop.f32.mrf.mxu2 }
 0x135   : > { %v719_v23 = vpop.f32.mrf.mxu3  ;;  %v755_v25 = vadd.f32 %v695_v20, %v571_v18 }
 0x136   : > { %v763_v1 = vadd.f32 %v719_v23, %v2022_v62 }
 0x137   : > { %v2072_v27 = vadd.f32 %v1917_v40, %v755_v25  ;;  %v451_v52 = vpop.f32.mrf.mxu0 }
 0x138   : > { %v2075_v29 = vadd.f32 %v1917_v40, %v763_v1  ;;  %v573_v32 = vpop.f32.mrf.mxu1 }
 0x139   : > { %v574_v6 = vadd.f32 %v573_v32, %v451_v52  ;;  %v610_v32 = vadd.f32 %v2051_v46, %v1998_v26 }
 0x13c   : > { %v698_v34 = vpop.f32.mrf.mxu2 }
 0x13d   : > { %v722_v9 = vpop.f32.mrf.mxu3  ;;  %v756_v35 = vadd.f32 %v698_v34, %v574_v6 }
 0x13e   : > { %v764_v37 = vadd.f32 %v722_v9, %v2028_v8 }
 0x13f   : > { %v2079_v10 = vadd.f32 %v1917_v40, %v756_v35  ;;  %v454_v62 = vpop.f32.mrf.mxu0 }
 0x140   : > { %v2082_v28 = vadd.f32 %v1917_v40, %v764_v37  ;;  %v576_v43 = vpop.f32.mrf.mxu1 }
 0x141   : > { %v577_v17 = vadd.f32 %v576_v43, %v454_v62 }
 0x144   : > { %v701_v47 = vpop.f32.mrf.mxu2 }
 0x145   : > { %v725_v48 = vpop.f32.mrf.mxu3  ;;  %v757_v51 = vadd.f32 %v701_v47, %v577_v17 }
 0x146   : > { %v765_v54 = vadd.f32 %v725_v48, %v2034_v19 }
 0x147   : > { %v2086_v56 = vadd.f32 %v1917_v40, %v757_v51  ;;  %v457_v8 = vpop.f32.mrf.mxu0 }
 0x148   : > { %v2089_v58 = vadd.f32 %v1917_v40, %v765_v54  ;;  %v579_v24 = vpop.f32.mrf.mxu1 }
 0x149   : > { %v580_v41 = vadd.f32 %v579_v24, %v457_v8 }
 0x14c   : > { %v704_v59 = vpop.f32.mrf.mxu2 }
 0x14d   : > { %v728_v2 = vpop.f32.mrf.mxu3  ;;  %v758_v3 = vadd.f32 %v704_v59, %v580_v41 }
 0x14e   : > { %v766_v49 = vadd.f32 %v728_v2, %v2040_v30 }
 0x14f   : > { %v2093_v5 = vadd.f32 %v1917_v40, %v758_v3  ;;  %v460_v19 = vpop.f32.mrf.mxu0 }
 0x150   : > { %v2096_v7 = vadd.f32 %v1917_v40, %v766_v49  ;;  %v582_v11 = vpop.f32.mrf.mxu1 }
 0x151   : > { %v583_v14 = vadd.f32 %v582_v11, %v460_v19 }
 0x154   : > { %v707_v42 = vpop.f32.mrf.mxu2 }
 0x155   : > { %v731_v16 = vpop.f32.mrf.mxu3  ;;  %v759_v18 = vadd.f32 %v707_v42, %v583_v14 }
 0x156   : > { %v767_v20 = vadd.f32 %v731_v16, %v2046_v38 }
 0x157   : > { %v2100_v23 = vadd.f32 %v1917_v40, %v759_v18  ;;  %v463_v25 = vpop.f32.mrf.mxu0 }
 0x158   : > { %v2103_v30 = vadd.f32 %v1917_v40, %v767_v20  ;;  %v585_v1 = vpop.f32.mrf.mxu1 }
 0x159   : > { %v586_v52 = vadd.f32 %v585_v1, %v463_v25 }
 0x15c   : > { %v710_v6 = vpop.f32.mrf.mxu2  ;;  %810 = sbr.rel (%p2005_p1) target bundleno = 356 (0x164), region = 44 }
 0x15d   : > { %v734_v34 = vpop.f32.mrf.mxu3  ;;  %v760_v9 = vadd.f32 %v710_v6, %v586_v52 }
 0x15e   : > { %v768_v35 = vadd.f32 %v734_v34, %v610_v32 }
 0x15f   : > { %v2108_v37 = vadd.f32 %v1917_v40, %v760_v9 }
 0x160   : > { %v2111_v38 = vadd.f32 %v1917_v40, %v768_v35 }
 0x161   : > { %v1640_v62 = vmov 0.0  }
 0x162   : > { %811 = vst [vmem:[#allocation2] sm:$0x1] %v1640_v62 }
 0x163   : > { %812 = vst [vmem:[#allocation3] sm:$0x1] %v1640_v62 }
 0x164 PF: > { %p1386_p2 = scmp.ne.s32.totalorder %s1626_s22, 0 }
 0x166   : > { %815 = sbr.rel (%p1386_p2) target bundleno = 442 (0x1ba), region = 48 }
 0x16b   : > { %v817_v40 = vadd.f32 %v1934_v53, %v1923_v45  ;;  %928 = vst [vmem:[%s2114_s10] sm:$0xff] %v1923_v45  ;;  %v857_v26 = vmul.f32 %v1923_v45, %v1923_v45  ;;  %v858_v46 = vmul.f32 %v1934_v53, %v1934_v53  ;;  %v859_v17 = vmul.f32 %v1945_v61, %v1945_v61 }
 0x16c   : > { %929 = vst [vmem:[%s2114_s10 + $0x8] sm:$0xff] %v1934_v53  ;;  %v860_v48 = vmul.f32 %v1955_v4, %v1955_v4  ;;  %v861_v8 = vmul.f32 %v1966_v13, %v1966_v13  ;;  %v862_v59 = vmul.f32 %v1978_v21, %v1978_v21  ;;  %v863_v49 = vmul.f32 %v1990_v31, %v1990_v31 }
 0x16d   : > { %v818_v43 = vadd.f32 %v817_v40, %v1945_v61  ;;  %930 = vst [vmem:[%s2114_s10 + $0x10] sm:$0xff] %v1945_v61  ;;  %v889_v51 = vadd.f32 %v858_v46, %v857_v26  ;;  %v864_v14 = vmul.f32 %v2003_v36, %v2003_v36  ;;  %v865_v18 = vmul.f32 %v2013_v44, %v2013_v44 }
 0x16e   : > { %931 = vst [vmem:[%s2114_s10 + $0x18] sm:$0xff] %v1955_v4  ;;  %v866_v1 = vmul.f32 %v2019_v55, %v2019_v55  ;;  %v867_v6 = vmul.f32 %v2025_v0, %v2025_v0  ;;  %v868_v35 = vmul.f32 %v2031_v12, %v2031_v12  ;;  %v869_v26 = vmul.f32 %v2037_v22, %v2037_v22 }
 0x16f   : > { %v819_v47 = vadd.f32 %v818_v43, %v1955_v4  ;;  %932 = vst [vmem:[%s2114_s10 + $0x20] sm:$0xff] %v1966_v13  ;;  %v890_v24 = vadd.f32 %v889_v51, %v859_v17  ;;  %v870_v17 = vmul.f32 %v2043_v33, %v2043_v33  ;;  %v871_v51 = vmul.f32 %v2049_v39, %v2049_v39 }
 0x170   : > { %933 = vst [vmem:[%s2114_s10 + $0x28] sm:$0xff] %v1978_v21 }
 0x171   : > { %v820_v54 = vadd.f32 %v819_v47, %v1966_v13  ;;  %934 = vst [vmem:[%s2114_s10 + $0x30] sm:$0xff] %v1990_v31  ;;  %v891_v2 = vadd.f32 %v890_v24, %v860_v48  ;;  %v872_v24 = vmul.f32 %v2054_v50, %v2054_v50 }
 0x172   : > { %935 = vst [vmem:[%s2114_s10 + $0x38] sm:$0xff] %v2003_v36 }
 0x173   : > { %v821_v41 = vadd.f32 %v820_v54, %v1978_v21  ;;  %936 = vst [vmem:[%s2114_s10 + $0x40] sm:$0xff] %v2013_v44  ;;  %v892_v19 = vadd.f32 %v891_v2, %v861_v8  ;;  %v873_v2 = vmul.f32 %v2058_v60, %v2058_v60 }
 0x174   : > { %937 = vst [vmem:[%s2114_s10 + $0x48] sm:$0xff] %v2019_v55 }
 0x175   : > { %v822_v3 = vadd.f32 %v821_v41, %v1990_v31  ;;  %938 = vst [vmem:[%s2114_s10 + $0x50] sm:$0xff] %v2025_v0  ;;  %v893_v42 = vadd.f32 %v892_v19, %v862_v59  ;;  %v874_v19 = vmul.f32 %v2065_v15, %v2065_v15 }
 0x176   : > { %939 = vst [vmem:[%s2114_s10 + $0x58] sm:$0xff] %v2031_v12 }
 0x177   : > { %v823_v11 = vadd.f32 %v822_v3, %v2003_v36  ;;  %940 = vst [vmem:[%s2114_s10 + $0x60] sm:$0xff] %v2037_v22  ;;  %v894_v20 = vadd.f32 %v893_v42, %v863_v49  ;;  %v875_v42 = vmul.f32 %v2072_v27, %v2072_v27 }
 0x178   : > { %941 = vst [vmem:[%s2114_s10 + $0x68] sm:$0xff] %v2043_v33 }
 0x179   : > { %v824_v16 = vadd.f32 %v823_v11, %v2013_v44  ;;  %942 = vst [vmem:[%s2114_s10 + $0x70] sm:$0xff] %v2049_v39  ;;  %v895_v52 = vadd.f32 %v894_v20, %v864_v14  ;;  %v876_v20 = vmul.f32 %v2079_v10, %v2079_v10 }
 0x17a   : > { %943 = vst [vmem:[%s2114_s10 + $0x78] sm:$0xff] %v2054_v50 }
 0x17b   : > { %v825_v25 = vadd.f32 %v824_v16, %v2019_v55  ;;  %944 = vst [vmem:[%s2114_s10 + $0x80] sm:$0xff] %v2058_v60  ;;  %v896_v34 = vadd.f32 %v895_v52, %v865_v18  ;;  %v877_v52 = vmul.f32 %v2086_v56, %v2086_v56 }
 0x17c   : > { %945 = vst [vmem:[%s2114_s10 + $0x88] sm:$0xff] %v2065_v15 }
 0x17d   : > { %v826_v32 = vadd.f32 %v825_v25, %v2025_v0  ;;  %946 = vst [vmem:[%s2114_s10 + $0x90] sm:$0xff] %v2072_v27  ;;  %v897_v62 = vadd.f32 %v896_v34, %v866_v1  ;;  %v878_v34 = vmul.f32 %v2093_v5, %v2093_v5 }
 0x17e   : > { %947 = vst [vmem:[%s2114_s10 + $0x98] sm:$0xff] %v2079_v10 }
 0x17f   : > { %v827_v9 = vadd.f32 %v826_v32, %v2031_v12  ;;  %948 = vst [vmem:[%s2114_s10 + $0xa0] sm:$0xff] %v2086_v56  ;;  %v898_v46 = vadd.f32 %v897_v62, %v867_v6  ;;  %v879_v62 = vmul.f32 %v2100_v23, %v2100_v23 }
 0x180   : > { %949 = vst [vmem:[%s2114_s10 + $0xa8] sm:$0xff] %v2093_v5 }
 0x181   : > { %v828_v40 = vadd.f32 %v827_v9, %v2037_v22  ;;  %950 = vst [vmem:[%s2114_s10 + $0xb0] sm:$0xff] %v2100_v23  ;;  %v899_v47 = vadd.f32 %v898_v46, %v868_v35  ;;  %v880_v46 = vmul.f32 %v2108_v37, %v2108_v37 }
 0x182   : > { %951 = vst [vmem:[%s2114_s10 + $0xb8] sm:$0xff] %v2108_v37 }
 0x183   : > { %v829_v43 = vadd.f32 %v828_v40, %v2043_v33  ;;  %952 = vst [vmem:[%s2114_s10 + $0xc0] sm:$0xff] %v2061_v63  ;;  %v900_v54 = vadd.f32 %v899_v47, %v869_v26  ;;  %v881_v47 = vmul.f32 %v2061_v63, %v2061_v63 }
 0x184   : > { %953 = vst [vmem:[%s2114_s10 + $0xc8] sm:$0xff] %v2068_v57 }
 0x185   : > { %v830_v48 = vadd.f32 %v829_v43, %v2049_v39  ;;  %954 = vst [vmem:[%s2114_s10 + $0xd0] sm:$0xff] %v2075_v29  ;;  %v901_v41 = vadd.f32 %v900_v54, %v870_v17  ;;  %v882_v54 = vmul.f32 %v2068_v57, %v2068_v57 }
 0x186   : > { %955 = vst [vmem:[%s2114_s10 + $0xd8] sm:$0xff] %v2082_v28 }
 0x187   : > { %v831_v8 = vadd.f32 %v830_v48, %v2054_v50  ;;  %956 = vst [vmem:[%s2114_s10 + $0xe0] sm:$0xff] %v2089_v58  ;;  %v902_v3 = vadd.f32 %v901_v41, %v871_v51  ;;  %v883_v41 = vmul.f32 %v2075_v29, %v2075_v29 }
 0x188   : > { %957 = vst [vmem:[%s2114_s10 + $0xe8] sm:$0xff] %v2096_v7 }
 0x189   : > { %v832_v59 = vadd.f32 %v831_v8, %v2058_v60  ;;  %958 = vst [vmem:[%s2114_s10 + $0xf0] sm:$0xff] %v2103_v30  ;;  %v903_v11 = vadd.f32 %v902_v3, %v872_v24  ;;  %v884_v3 = vmul.f32 %v2082_v28, %v2082_v28 }
 0x18a   : > { %959 = vst [vmem:[%s2114_s10 + $0xf8] sm:$0xff] %v2111_v38 }
 0x18b   : > { %v833_v49 = vadd.f32 %v832_v59, %v2065_v15  ;;  %v904_v16 = vadd.f32 %v903_v11, %v873_v2  ;;  %v885_v11 = vmul.f32 %v2089_v58, %v2089_v58 }
 0x18d   : > { %v834_v14 = vadd.f32 %v833_v49, %v2072_v27  ;;  %v905_v25 = vadd.f32 %v904_v16, %v874_v19  ;;  %v886_v16 = vmul.f32 %v2096_v7, %v2096_v7 }
 0x18f   : > { %v835_v18 = vadd.f32 %v834_v14, %v2079_v10  ;;  %v906_v32 = vadd.f32 %v905_v25, %v875_v42  ;;  %v887_v25 = vmul.f32 %v2103_v30, %v2103_v30 }
 0x191   : > { %v836_v1 = vadd.f32 %v835_v18, %v2086_v56  ;;  %v907_v9 = vadd.f32 %v906_v32, %v876_v20  ;;  %v888_v32 = vmul.f32 %v2111_v38, %v2111_v38 }
 0x193   : > { %v837_v6 = vadd.f32 %v836_v1, %v2093_v5  ;;  %v908_v40 = vadd.f32 %v907_v9, %v877_v52 }
 0x195   : > { %v838_v35 = vadd.f32 %v837_v6, %v2100_v23  ;;  %v909_v43 = vadd.f32 %v908_v40, %v878_v34 }
 0x197   : > { %v839_v26 = vadd.f32 %v838_v35, %v2108_v37  ;;  %v910_v48 = vadd.f32 %v909_v43, %v879_v62 }
 0x199   : > { %v840_v17 = vadd.f32 %v839_v26, %v2061_v63  ;;  %v911_v8 = vadd.f32 %v910_v48, %v880_v46 }
 0x19b   : > { %v841_v51 = vadd.f32 %v840_v17, %v2068_v57  ;;  %v912_v59 = vadd.f32 %v911_v8, %v881_v47  ;;  %v816_v47 = vld [vmem:[#allocation2] sm:$0x1] }
 0x19d   : > { %v842_v24 = vadd.f32 %v841_v51, %v2075_v29  ;;  %v913_v49 = vadd.f32 %v912_v59, %v882_v54 }
 0x19f   : > { %v843_v2 = vadd.f32 %v842_v24, %v2082_v28  ;;  %v914_v14 = vadd.f32 %v913_v49, %v883_v41  ;;  %v856_v41 = vld [vmem:[#allocation3] sm:$0x1] }
 0x1a1   : > { %v844_v19 = vadd.f32 %v843_v2, %v2089_v58  ;;  %v915_v18 = vadd.f32 %v914_v14, %v884_v3 }
 0x1a3   : > { %v845_v42 = vadd.f32 %v844_v19, %v2096_v7  ;;  %v916_v1 = vadd.f32 %v915_v18, %v885_v11 }
 0x1a5   : > { %v846_v20 = vadd.f32 %v845_v42, %v2103_v30  ;;  %v917_v6 = vadd.f32 %v916_v1, %v886_v16 }
 0x1a7   : > { %v847_v52 = vadd.f32 %v846_v20, %v2111_v38  ;;  %v918_v9 = vadd.f32 %v917_v6, %v887_v25 }
 0x1a9   : > { %v848_v34 = vrot.slane %v847_v52, 4  ;;  %v919_v62 = vadd.f32 %v918_v9, %v888_v32 }
 0x1ab   : > { %v849_v35 = vadd.f32 %v848_v34, %v847_v52  ;;  %v920_v26 = vrot.slane %v919_v62, 4 }
 0x1ad   : > { %v850_v40 = vrot.slane %v849_v35, 2  ;;  %v921_v43 = vadd.f32 %v920_v26, %v919_v62 }
 0x1af   : > { %v851_v46 = vadd.f32 %v850_v40, %v849_v35  ;;  %v922_v48 = vrot.slane %v921_v43, 2 }
 0x1b1   : > { %v852_v17 = vrot.slane %v851_v46, 1  ;;  %v923_v54 = vadd.f32 %v922_v48, %v921_v43 }
 0x1b3   : > { %v853_v51 = vadd.f32 %v852_v17, %v851_v46  ;;  %v924_v24 = vrot.slane %v923_v54, 1 }
 0x1b5   : > { %v854_v8 = vadd.f32 %v853_v51, %v816_v47  ;;  %v925_v59 = vadd.f32 %v924_v24, %v923_v54 }
 0x1b7   : > { %855 = vst [vmem:[#allocation2] sm:$0x1] %v854_v8  ;;  %v926_v2 = vadd.f32 %v925_v59, %v856_v41 }
 0x1b9   : > { %927 = vst [vmem:[#allocation3] sm:$0x1] %v926_v2 }
 0x1ba PF: > { %p1387_p4 = scmp.ne.s32.totalorder %s1626_s22, 1 }
 0x1bc   : > { %963 = sbr.rel (%p1387_p4) target bundleno = 523 (0x20b), region = 52 }
 0x1c1   : > { %v964_v3 = vld [vmem:[#allocation2] sm:$0x1]  ;;  %v966_v49 = vld [vmem:[#allocation3] sm:$0x1] }
 0x1c2   : > { %v965_v19 = vmul.f32 0.001953125, %v964_v3  ;;  %v967_v11 = vmul.f32 0.001953125, %v966_v49  ;;  %v2341_v8 = vld [vmem:[%s2594_s3] ss:$0 sm:$0xff] }
 0x1c4   : > { %v968_v14 = vmul.f32 %v965_v19, %v965_v19  ;;  %v2280_v20 = vperm.slane %v965_v19, 0 }
 0x1c6   : > { %v969_v42 = vsub.f32 %v967_v11, %v968_v14  ;;  %v973_v52 = vsub.f32 %v1923_v45, %v2280_v20  ;;  %v974_v32 = vsub.f32 %v1934_v53, %v2280_v20  ;;  %v975_v34 = vsub.f32 %v1945_v61, %v2280_v20  ;;  %v2361_v14 = vld [vmem:[%s2595_s4] ss:$0 sm:$0xff] }
 0x1c7   : > { %v976_v9 = vsub.f32 %v1955_v4, %v2280_v20  ;;  %v977_v35 = vsub.f32 %v1966_v13, %v2280_v20  ;;  %v978_v62 = vsub.f32 %v1978_v21, %v2280_v20  ;;  %v979_v45 = vsub.f32 %v1990_v31, %v2280_v20 }
 0x1c8   : > { %v1005_v16 = vadd.f32 1e-05, %v969_v42  ;;  %v980_v53 = vsub.f32 %v2003_v36, %v2280_v20  ;;  %v981_v26 = vsub.f32 %v2013_v44, %v2280_v20  ;;  %v982_v61 = vsub.f32 %v2019_v55, %v2280_v20 }
 0x1c9   : > { %v983_v13 = vsub.f32 %v2025_v0, %v2280_v20  ;;  %v984_v21 = vsub.f32 %v2031_v12, %v2280_v20  ;;  %v985_v31 = vsub.f32 %v2037_v22, %v2280_v20  ;;  %v986_v36 = vsub.f32 %v2043_v33, %v2280_v20 }
 0x1ca   : > { %1478 = vrsqrt.f32 %v1005_v16  ;;  %vm1012_vm2 = vweird.f32 %v1005_v16  ;;  %v987_v55 = vsub.f32 %v2049_v39, %v2280_v20  ;;  %v988_v46 = vsub.f32 %v2054_v50, %v2280_v20 }
 0x1cb   : > { %v989_v43 = vsub.f32 %v2058_v60, %v2280_v20  ;;  %v990_v0 = vsub.f32 %v2065_v15, %v2280_v20  ;;  %v991_v12 = vsub.f32 %v2072_v27, %v2280_v20  ;;  %v992_v22 = vsub.f32 %v2079_v10, %v2280_v20 }
 0x1cc   : > { %v993_v33 = vsub.f32 %v2086_v56, %v2280_v20  ;;  %v994_v47 = vsub.f32 %v2093_v5, %v2280_v20  ;;  %v995_v48 = vsub.f32 %v2100_v23, %v2280_v20  ;;  %v996_v51 = vsub.f32 %v2108_v37, %v2280_v20 }
 0x1cd   : > { %v997_v24 = vsub.f32 %v2061_v63, %v2280_v20  ;;  %v998_v41 = vsub.f32 %v2068_v57, %v2280_v20  ;;  %v999_v59 = vsub.f32 %v2075_v29, %v2280_v20  ;;  %v1000_v2 = vsub.f32 %v2082_v28, %v2280_v20 }
 0x1ce   : > { %v1001_v3 = vsub.f32 %v2089_v58, %v2280_v20  ;;  %v1002_v49 = vsub.f32 %v2096_v7, %v2280_v20  ;;  %v1003_v19 = vsub.f32 %v2103_v30, %v2280_v20 }
 0x1d0   : > { %v1479_v18 = vpop.eup %1478 }
 0x1d1   : > { %v1007_v25 = vmul.f32 %v1479_v18, %v1005_v16  ;;  %vm1013_vm3 = vweird.f32 %v1479_v18 }
 0x1d2   : > { %vm2302_vm4 = vmor %vm1012_vm2, %vm1013_vm3 }
 0x1d3   : > { %v1008_v1 = vmul.f32 %v1479_v18, %v1007_v25 }
 0x1d5   : > { %v1009_v6 = vmul.f32 0.5, %v1008_v1 }
 0x1d7   : > { %v1010_v40 = vsub.f32 1.5, %v1009_v6 }
 0x1d9   : > { %v1011_v44 = vmul.f32 %v1479_v18, %v1010_v40 }
 0x1db   : > { %v1015_v17 = vsel %vm2302_vm4, %v1479_v18, %v1011_v44 }
 0x1dc   : > { %v2336_v54 = vperm.slane %v1015_v17, 0 }
 0x1de   : > { %v1019_v11 = vmul.f32 %v2336_v54, %v973_v52  ;;  %v1020_v42 = vmul.f32 %v2336_v54, %v974_v32  ;;  %v1021_v16 = vmul.f32 %v2336_v54, %v975_v34  ;;  %v1022_v18 = vmul.f32 %v2336_v54, %v976_v9 }
 0x1df   : > { %v1023_v25 = vmul.f32 %v2336_v54, %v977_v35  ;;  %v1024_v1 = vmul.f32 %v2336_v54, %v978_v62  ;;  %v1025_v6 = vmul.f32 %v2336_v54, %v979_v45  ;;  %v1026_v40 = vmul.f32 %v2336_v54, %v980_v53 }
 0x1e0   : > { %v1055_v52 = vmul.f32 %v2341_v8, %v1019_v11  ;;  %v1056_v4 = vmul.f32 %v2341_v8, %v1020_v42  ;;  %v1057_v44 = vmul.f32 %v2341_v8, %v1021_v16  ;;  %v1058_v32 = vmul.f32 %v2341_v8, %v1022_v18 }
 0x1e1   : > { %v1059_v34 = vmul.f32 %v2341_v8, %v1023_v25  ;;  %v1060_v9 = vmul.f32 %v2341_v8, %v1024_v1  ;;  %v1061_v35 = vmul.f32 %v2341_v8, %v1025_v6  ;;  %v1004_v62 = vsub.f32 %v2111_v38, %v2280_v20 }
 0x1e2   : > { %v1091_v45 = vadd.f32 %v2361_v14, %v1055_v52  ;;  %v1092_v53 = vadd.f32 %v2361_v14, %v1056_v4  ;;  %v1093_v17 = vadd.f32 %v2361_v14, %v1057_v44  ;;  %v1062_v11 = vmul.f32 %v2341_v8, %v1026_v40 }
 0x1e3   : > { %v1094_v42 = vadd.f32 %v2361_v14, %v1058_v32  ;;  %v1095_v16 = vadd.f32 %v2361_v14, %v1059_v34  ;;  %v1096_v18 = vadd.f32 %v2361_v14, %v1060_v9  ;;  %v1097_v25 = vadd.f32 %v2361_v14, %v1061_v35 }
 0x1e4   : > { %1480 = vtanh.f32 %v1091_v45  ;;  %v1027_v1 = vmul.f32 %v2336_v54, %v981_v26  ;;  %v1028_v6 = vmul.f32 %v2336_v54, %v982_v61  ;;  %v1029_v52 = vmul.f32 %v2336_v54, %v983_v13 }
 0x1e5   : > { %1482 = vtanh.f32 %v1092_v53  ;;  %v1030_v4 = vmul.f32 %v2336_v54, %v984_v21  ;;  %v1031_v40 = vmul.f32 %v2336_v54, %v985_v31  ;;  %v1032_v44 = vmul.f32 %v2336_v54, %v986_v36 }
 0x1e6   : > { %1484 = vtanh.f32 %v1093_v17  ;;  %v1063_v32 = vmul.f32 %v2341_v8, %v1027_v1  ;;  %v1064_v34 = vmul.f32 %v2341_v8, %v1028_v6  ;;  %v1065_v9 = vmul.f32 %v2341_v8, %v1029_v52 }
 0x1e7   : > { %1486 = vtanh.f32 %v1094_v42  ;;  %v1098_v26 = vadd.f32 %v2361_v14, %v1062_v11  ;;  %v1066_v61 = vmul.f32 %v2341_v8, %v1030_v4  ;;  %v1067_v13 = vmul.f32 %v2341_v8, %v1031_v40 }
 0x1e8   : > { %1488 = vtanh.f32 %v1095_v16  ;;  %v1099_v21 = vadd.f32 %v2361_v14, %v1063_v32  ;;  %v1100_v31 = vadd.f32 %v2361_v14, %v1064_v34  ;;  %v1068_v36 = vmul.f32 %v2341_v8, %v1032_v44 }
 0x1e9   : > { %1490 = vtanh.f32 %v1096_v18  ;;  %v1101_v35 = vadd.f32 %v2361_v14, %v1065_v9  ;;  %v1102_v45 = vadd.f32 %v2361_v14, %v1066_v61  ;;  %v1103_v53 = vadd.f32 %v2361_v14, %v1067_v13 }
 0x1ea   : > { %v1481_v17 = vpop.eup %1480  ;;  %1492 = vtanh.f32 %v1097_v25  ;;  %v1033_v11 = vmul.f32 %v2336_v54, %v987_v55  ;;  %v1034_v42 = vmul.f32 %v2336_v54, %v988_v46  ;;  %v1035_v16 = vmul.f32 %v2336_v54, %v989_v43 }
 0x1eb   : > { %v1483_v18 = vpop.eup %1482  ;;  %1155 = vst [vmem:[%s2114_s10] sm:$0xff] %v1481_v17  ;;  %1494 = vtanh.f32 %v1098_v26  ;;  %v1036_v39 = vmul.f32 %v2336_v54, %v990_v0  ;;  %v1037_v50 = vmul.f32 %v2336_v54, %v991_v12  ;;  %v1038_v60 = vmul.f32 %v2336_v54, %v992_v22 }
 0x1ec   : > { %v1485_v55 = vpop.eup %1484  ;;  %1156 = vst [vmem:[%s2114_s10 + $0x8] sm:$0xff] %v1483_v18  ;;  %1496 = vtanh.f32 %v1099_v21  ;;  %v1069_v46 = vmul.f32 %v2341_v8, %v1033_v11  ;;  %v1070_v15 = vmul.f32 %v2341_v8, %v1034_v42  ;;  %v1071_v43 = vmul.f32 %v2341_v8, %v1035_v16 }
 0x1ed   : > { %v1487_v0 = vpop.eup %1486  ;;  %1157 = vst [vmem:[%s2114_s10 + $0x10] sm:$0xff] %v1485_v55  ;;  %1498 = vtanh.f32 %v1100_v31  ;;  %v1104_v27 = vadd.f32 %v2361_v14, %v1068_v36  ;;  %v1072_v10 = vmul.f32 %v2341_v8, %v1036_v39  ;;  %v1073_v12 = vmul.f32 %v2341_v8, %v1037_v50 }
 0x1ee   : > { %v1489_v22 = vpop.eup %1488  ;;  %1158 = vst [vmem:[%s2114_s10 + $0x18] sm:$0xff] %v1487_v0  ;;  %1500 = vtanh.f32 %v1101_v35  ;;  %v1105_v25 = vadd.f32 %v2361_v14, %v1069_v46  ;;  %v1106_v1 = vadd.f32 %v2361_v14, %v1070_v15  ;;  %v1074_v6 = vmul.f32 %v2341_v8, %v1038_v60 }
 0x1ef   : > { %v1491_v52 = vpop.eup %1490  ;;  %1159 = vst [vmem:[%s2114_s10 + $0x20] sm:$0xff] %v1489_v22  ;;  %1502 = vtanh.f32 %v1102_v45  ;;  %v1107_v4 = vadd.f32 %v2361_v14, %v1071_v43  ;;  %v1108_v40 = vadd.f32 %v2361_v14, %v1072_v10  ;;  %v1109_v44 = vadd.f32 %v2361_v14, %v1073_v12 }
 0x1f0   : > { %v1493_v32 = vpop.eup %1492  ;;  %1160 = vst [vmem:[%s2114_s10 + $0x28] sm:$0xff] %v1491_v52  ;;  %1504 = vtanh.f32 %v1103_v53  ;;  %v1039_v34 = vmul.f32 %v2336_v54, %v993_v33  ;;  %v1040_v9 = vmul.f32 %v2336_v54, %v994_v47  ;;  %v1041_v26 = vmul.f32 %v2336_v54, %v995_v48 }
 0x1f1   : > { %v1495_v61 = vpop.eup %1494  ;;  %1161 = vst [vmem:[%s2114_s10 + $0x30] sm:$0xff] %v1493_v32  ;;  %1506 = vtanh.f32 %v1104_v27  ;;  %v1042_v56 = vmul.f32 %v2336_v54, %v996_v51  ;;  %v1043_v5 = vmul.f32 %v2336_v54, %v997_v24  ;;  %v1044_v23 = vmul.f32 %v2336_v54, %v998_v41 }
 0x1f2   : > { %v1497_v33 = vpop.eup %1496  ;;  %1162 = vst [vmem:[%s2114_s10 + $0x38] sm:$0xff] %v1495_v61  ;;  %1508 = vtanh.f32 %v1105_v25  ;;  %v1075_v47 = vmul.f32 %v2341_v8, %v1039_v34  ;;  %v1076_v37 = vmul.f32 %v2341_v8, %v1040_v9  ;;  %v1077_v48 = vmul.f32 %v2341_v8, %v1041_v26 }
 0x1f3   : > { %v1499_v51 = vpop.eup %1498  ;;  %1163 = vst [vmem:[%s2114_s10 + $0x40] sm:$0xff] %v1497_v33  ;;  %1510 = vtanh.f32 %v1106_v1  ;;  %v1110_v63 = vadd.f32 %v2361_v14, %v1074_v6  ;;  %v1078_v57 = vmul.f32 %v2341_v8, %v1042_v56  ;;  %v1079_v24 = vmul.f32 %v2341_v8, %v1043_v5 }
 0x1f4   : > { %v1501_v41 = vpop.eup %1500  ;;  %1164 = vst [vmem:[%s2114_s10 + $0x48] sm:$0xff] %v1499_v51  ;;  %1512 = vtanh.f32 %v1107_v4  ;;  %v1111_v13 = vadd.f32 %v2361_v14, %v1075_v47  ;;  %v1112_v21 = vadd.f32 %v2361_v14, %v1076_v37  ;;  %v1080_v31 = vmul.f32 %v2341_v8, %v1044_v23 }
 0x1f5   : > { %v1503_v36 = vpop.eup %1502  ;;  %1165 = vst [vmem:[%s2114_s10 + $0x50] sm:$0xff] %v1501_v41  ;;  %1514 = vtanh.f32 %v1108_v40  ;;  %v1113_v35 = vadd.f32 %v2361_v14, %v1077_v48  ;;  %v1114_v45 = vadd.f32 %v2361_v14, %v1078_v57  ;;  %v1115_v53 = vadd.f32 %v2361_v14, %v1079_v24 }
 0x1f6   : > { %v1505_v17 = vpop.eup %1504  ;;  %1166 = vst [vmem:[%s2114_s10 + $0x58] sm:$0xff] %v1503_v36  ;;  %1516 = vtanh.f32 %v1109_v44  ;;  %v1045_v11 = vmul.f32 %v2336_v54, %v999_v59  ;;  %v1046_v42 = vmul.f32 %v2336_v54, %v1000_v2  ;;  %v1047_v16 = vmul.f32 %v2336_v54, %v1001_v3 }
 0x1f7   : > { %v1507_v18 = vpop.eup %1506  ;;  %1167 = vst [vmem:[%s2114_s10 + $0x60] sm:$0xff] %v1505_v17  ;;  %1518 = vtanh.f32 %v1110_v63  ;;  %v1048_v29 = vmul.f32 %v2336_v54, %v1002_v49  ;;  %v1049_v28 = vmul.f32 %v2336_v54, %v1003_v19  ;;  %v1050_v58 = vmul.f32 %v2336_v54, %v1004_v62 }
 0x1f8   : > { %v1509_v59 = vpop.eup %1508  ;;  %1168 = vst [vmem:[%s2114_s10 + $0x68] sm:$0xff] %v1507_v18  ;;  %1520 = vtanh.f32 %v1111_v13  ;;  %v1081_v2 = vmul.f32 %v2341_v8, %v1045_v11  ;;  %v1082_v7 = vmul.f32 %v2341_v8, %v1046_v42  ;;  %v1083_v3 = vmul.f32 %v2341_v8, %v1047_v16 }
 0x1f9   : > { %v1511_v49 = vpop.eup %1510  ;;  %1169 = vst [vmem:[%s2114_s10 + $0x70] sm:$0xff] %v1509_v59  ;;  %1522 = vtanh.f32 %v1112_v21  ;;  %v1116_v30 = vadd.f32 %v2361_v14, %v1080_v31  ;;  %v1084_v38 = vmul.f32 %v2341_v8, %v1048_v29  ;;  %v1085_v19 = vmul.f32 %v2341_v8, %v1049_v28 }
 0x1fa   : > { %v1513_v20 = vpop.eup %1512  ;;  %1170 = vst [vmem:[%s2114_s10 + $0x78] sm:$0xff] %v1511_v49  ;;  %1524 = vtanh.f32 %v1113_v35  ;;  %v1117_v54 = vadd.f32 %v2361_v14, %v1081_v2  ;;  %v1118_v39 = vadd.f32 %v2361_v14, %v1082_v7  ;;  %v1086_v50 = vmul.f32 %v2341_v8, %v1050_v58 }
 0x1fb   : > { %v1515_v62 = vpop.eup %1514  ;;  %1171 = vst [vmem:[%s2114_s10 + $0x80] sm:$0xff] %v1513_v20  ;;  %1526 = vtanh.f32 %v1114_v45  ;;  %v1119_v55 = vadd.f32 %v2361_v14, %v1083_v3  ;;  %v1120_v15 = vadd.f32 %v2361_v14, %v1084_v38  ;;  %v1121_v0 = vadd.f32 %v2361_v14, %v1085_v19 }
 0x1fc   : > { %v1517_v60 = vpop.eup %1516  ;;  %1172 = vst [vmem:[%s2114_s10 + $0x88] sm:$0xff] %v1515_v62  ;;  %1528 = vtanh.f32 %v1115_v53  ;;  %v1122_v27 = vadd.f32 %v2361_v14, %v1086_v50 }
 0x1fd   : > { %v1519_v46 = vpop.eup %1518  ;;  %1173 = vst [vmem:[%s2114_s10 + $0x90] sm:$0xff] %v1517_v60  ;;  %1530 = vtanh.f32 %v1116_v30 }
 0x1fe   : > { %v1521_v43 = vpop.eup %1520  ;;  %1174 = vst [vmem:[%s2114_s10 + $0x98] sm:$0xff] %v1519_v46  ;;  %1532 = vtanh.f32 %v1117_v54 }
 0x1ff   : > { %v1523_v8 = vpop.eup %1522  ;;  %1175 = vst [vmem:[%s2114_s10 + $0xa0] sm:$0xff] %v1521_v43  ;;  %1534 = vtanh.f32 %v1118_v39 }
 0x200   : > { %v1525_v10 = vpop.eup %1524  ;;  %1176 = vst [vmem:[%s2114_s10 + $0xa8] sm:$0xff] %v1523_v8  ;;  %1536 = vtanh.f32 %v1119_v55 }
 0x201   : > { %v1527_v12 = vpop.eup %1526  ;;  %1177 = vst [vmem:[%s2114_s10 + $0xb0] sm:$0xff] %v1525_v10  ;;  %1538 = vtanh.f32 %v1120_v15 }
 0x202   : > { %v1529_v22 = vpop.eup %1528  ;;  %1178 = vst [vmem:[%s2114_s10 + $0xb8] sm:$0xff] %v1527_v12  ;;  %1540 = vtanh.f32 %v1121_v0 }
 0x203   : > { %v1531_v25 = vpop.eup %1530  ;;  %1179 = vst [vmem:[%s2114_s10 + $0xc0] sm:$0xff] %v1529_v22  ;;  %1542 = vtanh.f32 %v1122_v27 }
 0x204   : > { %v1533_v1 = vpop.eup %1532  ;;  %1180 = vst [vmem:[%s2114_s10 + $0xc8] sm:$0xff] %v1531_v25 }
 0x205   : > { %v1535_v14 = vpop.eup %1534  ;;  %1181 = vst [vmem:[%s2114_s10 + $0xd0] sm:$0xff] %v1533_v1 }
 0x206   : > { %v1537_v6 = vpop.eup %1536  ;;  %1182 = vst [vmem:[%s2114_s10 + $0xd8] sm:$0xff] %v1535_v14 }
 0x207   : > { %v1539_v52 = vpop.eup %1538  ;;  %1183 = vst [vmem:[%s2114_s10 + $0xe0] sm:$0xff] %v1537_v6 }
 0x208   : > { %v1541_v4 = vpop.eup %1540  ;;  %1184 = vst [vmem:[%s2114_s10 + $0xe8] sm:$0xff] %v1539_v52 }
 0x209   : > { %v1543_v40 = vpop.eup %1542  ;;  %1185 = vst [vmem:[%s2114_s10 + $0xf0] sm:$0xff] %v1541_v4 }
 0x20a   : > { %1186 = vst [vmem:[%s2114_s10 + $0xf8] sm:$0xff] %v1543_v40 }
 0x20b PF: > { %s1393_s13 = sshll.u32 %s1622_s21, 8  ;;  %s1200_s17 = sshll.u32 %s2114_s10, 4  ;;  %s1201_s17 = int_to_ptr.vmem [resolvable:$true] %s1200_s17 }
 0x20c   : > { %s1199_s16 = scalar_lea.hbm %s2596_s5, %s1393_s13  ;;  %s1188_s27 = scalar_lea.sflag [#allocation5], %s227_s30 }
 0x20d   : > { %s1202_s26 = sshll.u32 %s1199_s16, 4  ;;  %s1564_s21 = scalar_lea.hbm %s2596_s5, 512  ;;  %s1203_s26 = int_to_ptr.hbm [resolvable:$true] %s1202_s26 }
 0x20e   : > { %s1558_s22 = sshra.s32 %s1203_s26, 4  ;;  %s1559_s22 = int_to_ptr.hbm [resolvable:$true] %s1558_s22 }
 0x20f   : > { %s1560_s6 = scalar_lea.hbm %s1559_s22, 256  ;;  %p1565_p9 = scmp.lt.s32.totalorder %s1559_s22, %s2596_s5 }
 0x210   : > { %p1561_p5 = scmp.ne.s32.totalorder %s1559_s22, %s1560_s6  ;;  %p1566_p10 = scmp.lt.s32.totalorder %s1564_s21, %s1560_s6 }
 0x212   : > { %p1562_p6 = pnand %p1561_p5, %p1725_p3  ;;  %p1567_p11 = por %p1566_p10, %p1565_p9 }
 0x214   : > { %p1563_p7 = pneg %p1562_p6 }
 0x216   : > { %p1568_p12 = pnand %p1567_p11, %p1563_p7 }
 0x218   : > { %1571 = shalt.err (!%p1568_p12)
}
 0x219   : > { %s1641_s30 = smov 128   ;;  %s1642_s10 = smov 8  }
 0x21a   : > { %1401 = dma.vmem_to_hbm [thread:$0]  (%p1725_p3), %s1201_s17, 4096, %s1203_s26, %s1188_s27, %s1641_s30, %s1641_s30, %s1642_s10  }
 0x21b PF: > { %p1407_p13 = scmp.ge.s32.totalorder %s1638_s25, 2  ;;  %s1217_s13 = sand.u32 1, %s1610_s18  }
 0x21c   : > { %s1218_s0 = scalar_lea.sflag [#allocation5], %s1217_s13 }
 0x21d   : > { %p1404_p0 = pnand %p1407_p13, %p1736_p8 }
 0x21f   : > { %p1405_p1 = pneg %p1404_p0 }
 0x221   : > { %1605 = dma.done.wait (%p1405_p1), %s1218_s0, 4096  }
 0x222   : > { %1607 = vsyncadd (%p1405_p1), %s1218_s0, 4294963200  ;;  %s18_s25 = sadd.s32 1, %s1638_s25   ;;  %s2604_s18 = smov %s1614_s19 }
 0x223   : > { %p15_p2 = scmp.ge.s32.totalorder %s18_s25, 6   ;;  %s2605_s19 = smov %s1618_s20 }
 0x224   : > { %s2606_s20 = smov %s1734_s8  ;;  %s2607_s21 = smov %s1630_s23 }
 0x225   : > { %s2608_s22 = smov %s1634_s24  ;;  %s2609_s23 = smov %s2612_s28 }
 0x226   : > { %s2610_s24 = smov %s2616_s29  ;;  %17 = sbr.rel (!%p15_p2) target bundleno = 7 (0x7), region = 89 }
 0x22b   :  { %1224 = vsyncpa [#allocation5], 1 }
 0x22c   :  { %1226 = vsyncpa [#allocation5 + $0x1], 1 }

</bundles_post_ra>
